<compile_context>
chip_gen: v7x
topology: tpu7x:2x2x1
jax: 0.10.0
libtpu: 0.0.40
codegen_flags: <defaults>
</compile_context>

<pallas_src>
import jax
import jax.numpy as jnp
import numpy as np
from jax.experimental import pallas as pl
from jax.experimental.pallas import tpu as pltpu

PRELU_INIT = 0.25  # nn.PReLU() default (num_parameters=1), baked as a constant.
# TODO(synk): a trained checkpoint would need per-layer PReLU alphas passed in
# (e.g. one small SMEM operand) instead of the baked init constant.


# ----------------------------------------------------------------------------
# Single fused kernel: all three branch MLPs + combine MLP in one body.
# ----------------------------------------------------------------------------
def _fused_mlp_kernel(*refs):
    (ge_ref, d_ref, mut_ref,
     wg0, bg0, wg1, bg1, wg2, bg2,          # geMLP
     wd0, bd0, wd1, bd1, wd2, bd2,          # dMLP
     wm0, bm0, wm1, bm1, wm2, bm2,          # mutMLP
     wc0g, wc0d, wc0m, bc0,                 # combine layer 0 (weight split by branch)
     wc1, bc1, wc2, bc2, wc3, bc3,          # combine layers 1..3
     o_ref) = refs

    def mm(x, w_ref):
        # bf16 x bf16 -> f32 accumulate on the MXU.
        return jnp.dot(x.astype(jnp.bfloat16), w_ref[...],
                       preferred_element_type=jnp.float32)

    def prelu(y):
        return jnp.where(y >= 0.0, y, PRELU_INIT * y)

    def lin_prelu(x, w_ref, b_ref):
        return prelu(mm(x, w_ref) + b_ref[...])

    # --- ge branch: in -> 256 -> 256 -> 64 ---
    ge = lin_prelu(ge_ref[...], wg0, bg0)
    ge = lin_prelu(ge, wg1, bg1)
    ge = lin_prelu(ge, wg2, bg2)

    # --- drug branch: in -> 128 -> 128 -> 64 ---
    d = lin_prelu(d_ref[...], wd0, bd0)
    d = lin_prelu(d, wd1, bd1)
    d = lin_prelu(d, wd2, bd2)

    # --- mutation branch: in -> 256 -> 256 -> 128 ---
    m = lin_prelu(mut_ref[...], wm0, bm0)
    m = lin_prelu(m, wm1, bm1)
    m = lin_prelu(m, wm2, bm2)

    # --- combine: concat([ge, d, m]) @ Wc0 == sum of three partial matmuls ---
    x = prelu(mm(ge, wc0g) + mm(d, wc0d) + mm(m, wc0m) + bc0[...])
    x = lin_prelu(x, wc1, bc1)
    x = lin_prelu(x, wc2, bc2)
    o_ref[...] = mm(x, wc3) + bc3[...]      # final plain Linear(64 -> 1)


def mlp_w_mutation_forward(kernel_params, geLatentVec, dLatentVec, mutations):
    """kernel_params: flat list of weight/bias operands from prepare_kernel_params."""
    B = geLatentVec.shape[0]
    operands = [geLatentVec, dLatentVec, mutations] + list(kernel_params)
    vmem = pl.BlockSpec(memory_space=pltpu.MemorySpace.VMEM)
    return pl.pallas_call(
        _fused_mlp_kernel,
        out_shape=jax.ShapeDtypeStruct((B, 1), jnp.float32),
        in_specs=[vmem] * len(operands),
        out_specs=vmem,
    )(*operands)


mlp_w_mutation_forward = jax.jit(mlp_w_mutation_forward)


# ----------------------------------------------------------------------------
# Parameter construction (deterministic, PyTorch-Linear-like uniform init).
# ----------------------------------------------------------------------------
def _init_linear(key, in_f, out_f):
    kw, kb = jax.random.split(key)
    bound = 1.0 / jnp.sqrt(jnp.float32(in_f))
    w = jax.random.uniform(kw, (in_f, out_f), jnp.float32, -bound, bound)
    b = jax.random.uniform(kb, (out_f,), jnp.float32, -bound, bound)
    return w, b


def _init_mlp(key, dims):
    keys = jax.random.split(key, len(dims) - 1)
    return [_init_linear(k, dims[i], dims[i + 1]) for i, k in enumerate(keys)]


def init_params(key, drug_latent_size, ge_latent_size, mutations_size):
    k_ge, k_d, k_mut, k_cmb = jax.random.split(key, 4)
    return {
        "ge":  _init_mlp(k_ge,  [ge_latent_size, 256, 256, 64]),
        "d":   _init_mlp(k_d,   [drug_latent_size, 128, 128, 64]),
        "mut": _init_mlp(k_mut, [mutations_size, 256, 256, 128]),
        "cmb": _init_mlp(k_cmb, [256, 128, 128, 64, 1]),
    }


def prepare_kernel_params(params):
    """Flatten params into the exact operand order the fused kernel expects:
    bf16 weights, f32 (1, out) biases; first combine weight split by branch."""
    def wb(w, b):
        return [w.astype(jnp.bfloat16), b.reshape(1, -1).astype(jnp.float32)]

    ops = []
    for w, b in params["ge"]:
        ops += wb(w, b)
    for w, b in params["d"]:
        ops += wb(w, b)
    for w, b in params["mut"]:
        ops += wb(w, b)
    wc0, bc0 = params["cmb"][0]                 # (256, 128) -> ge|d|m row blocks
    ops += [wc0[:64].astype(jnp.bfloat16),
            wc0[64:128].astype(jnp.bfloat16),
            wc0[128:].astype(jnp.bfloat16),
            bc0.reshape(1, -1).astype(jnp.float32)]
    for w, b in params["cmb"][1:]:
        ops += wb(w, b)
    return ops


# ----------------------------------------------------------------------------
# Pure-JAX f32 reference (mirrors MLP_w_mutation.forward) for a sanity check.
# ----------------------------------------------------------------------------
def reference_forward(params, ge, d, m):
    def branch(x, layers):
        for w, b in layers:
            y = x @ w + b
            x = jnp.where(y >= 0.0, y, PRELU_INIT * y)
        return x

    ge = branch(ge, params["ge"])
    d = branch(d, params["d"])
    m = branch(m, params["mut"])
    x = jnp.concatenate([ge, d, m], axis=1)     # (B, 64+64+128=256)
    for w, b in params["cmb"][:-1]:
        y = x @ w + b
        x = jnp.where(y >= 0.0, y, PRELU_INIT * y)
    w_last, b_last = params["cmb"][-1]
    return x @ w_last + b_last                  # (B, 1)


if __name__ == "__main__":
    drug_latent_size = 16
    ge_latent_size = 32
    mutations_size = 48
    batch = 8

    key = jax.random.PRNGKey(0)
    k_params, k_ge, k_d, k_m = jax.random.split(key, 4)

    params = init_params(k_params, drug_latent_size, ge_latent_size, mutations_size)
    kernel_params = prepare_kernel_params(params)

    geLatentVec = jax.random.normal(k_ge, (batch, ge_latent_size), jnp.float32)
    dLatentVec = jax.random.normal(k_d, (batch, drug_latent_size), jnp.float32)
    mutations = jax.random.normal(k_m, (batch, mutations_size), jnp.float32)

    out = mlp_w_mutation_forward(kernel_params, geLatentVec, dLatentVec, mutations)
    out = jax.block_until_ready(out)
    assert out.shape == (batch, 1), out.shape

    ref = reference_forward(params, geLatentVec, dLatentVec, mutations)
    np.testing.assert_allclose(np.asarray(out), np.asarray(ref), rtol=2e-2, atol=2e-2)

    print("KERNEL_OK")
</pallas_src>

<mosaic_0001>
module attributes {stable_mosaic.version = 11 : i64} {
  func.func @_fused_mlp_kernel(%arg0: memref<8x32xf32, #tpu.memory_space<vmem>>, %arg1: memref<8x16xf32, #tpu.memory_space<vmem>>, %arg2: memref<8x48xf32, #tpu.memory_space<vmem>>, %arg3: memref<32x256xbf16, #tpu.memory_space<vmem>>, %arg4: memref<1x256xf32, #tpu.memory_space<vmem>>, %arg5: memref<256x256xbf16, #tpu.memory_space<vmem>>, %arg6: memref<1x256xf32, #tpu.memory_space<vmem>>, %arg7: memref<256x64xbf16, #tpu.memory_space<vmem>>, %arg8: memref<1x64xf32, #tpu.memory_space<vmem>>, %arg9: memref<16x128xbf16, #tpu.memory_space<vmem>>, %arg10: memref<1x128xf32, #tpu.memory_space<vmem>>, %arg11: memref<128x128xbf16, #tpu.memory_space<vmem>>, %arg12: memref<1x128xf32, #tpu.memory_space<vmem>>, %arg13: memref<128x64xbf16, #tpu.memory_space<vmem>>, %arg14: memref<1x64xf32, #tpu.memory_space<vmem>>, %arg15: memref<48x256xbf16, #tpu.memory_space<vmem>>, %arg16: memref<1x256xf32, #tpu.memory_space<vmem>>, %arg17: memref<256x256xbf16, #tpu.memory_space<vmem>>, %arg18: memref<1x256xf32, #tpu.memory_space<vmem>>, %arg19: memref<256x128xbf16, #tpu.memory_space<vmem>>, %arg20: memref<1x128xf32, #tpu.memory_space<vmem>>, %arg21: memref<64x128xbf16, #tpu.memory_space<vmem>>, %arg22: memref<64x128xbf16, #tpu.memory_space<vmem>>, %arg23: memref<128x128xbf16, #tpu.memory_space<vmem>>, %arg24: memref<1x128xf32, #tpu.memory_space<vmem>>, %arg25: memref<128x128xbf16, #tpu.memory_space<vmem>>, %arg26: memref<1x128xf32, #tpu.memory_space<vmem>>, %arg27: memref<128x64xbf16, #tpu.memory_space<vmem>>, %arg28: memref<1x64xf32, #tpu.memory_space<vmem>>, %arg29: memref<64x1xbf16, #tpu.memory_space<vmem>>, %arg30: memref<1x1xf32, #tpu.memory_space<vmem>>, %arg31: memref<8x1xf32, #tpu.memory_space<vmem>>) attributes {dimension_semantics = [], scalar_prefetch = 0 : i64, scratch_operands = 0 : i64, tpu.core_type = #tpu.core_type<tc>} {
    %c0 = arith.constant 0 : index
    %c0_0 = arith.constant 0 : index
    %0 = vector.load %arg0[%c0, %c0_0] : memref<8x32xf32, #tpu.memory_space<vmem>>, vector<8x32xf32>
    %1 = arith.truncf %0 : vector<8x32xf32> to vector<8x32xbf16>
    %c0_1 = arith.constant 0 : index
    %c0_2 = arith.constant 0 : index
    %2 = vector.load %arg3[%c0_1, %c0_2] : memref<32x256xbf16, #tpu.memory_space<vmem>>, vector<32x256xbf16>
    %cst = arith.constant dense<0.000000e+00> : vector<8x256xf32>
    %3 = tpu.matmul %1, %2, %cst {dimension_numbers = #tpu.dot_dimension_numbers<[1], [0], [0], [1], [0, 0, 1, 1], [], []>} : vector<8x32xbf16>, vector<32x256xbf16>, vector<8x256xf32> -> vector<8x256xf32>
    %c0_3 = arith.constant 0 : index
    %c0_4 = arith.constant 0 : index
    %4 = vector.load %arg4[%c0_3, %c0_4] : memref<1x256xf32, #tpu.memory_space<vmem>>, vector<1x256xf32>
    %5 = vector.broadcast %4 : vector<1x256xf32> to vector<8x256xf32>
    %6 = arith.addf %3, %5 : vector<8x256xf32>
    %cst_5 = arith.constant 0.000000e+00 : f32
    %7 = vector.broadcast %cst_5 : f32 to vector<8x256xf32>
    %8 = arith.cmpf oge, %6, %7 : vector<8x256xf32>
    %cst_6 = arith.constant 2.500000e-01 : f32
    %9 = vector.broadcast %cst_6 : f32 to vector<8x256xf32>
    %10 = arith.mulf %9, %6 : vector<8x256xf32>
    %11 = arith.select %8, %6, %10 : vector<8x256xi1>, vector<8x256xf32>
    %12 = arith.truncf %11 : vector<8x256xf32> to vector<8x256xbf16>
    %c0_7 = arith.constant 0 : index
    %c0_8 = arith.constant 0 : index
    %13 = vector.load %arg5[%c0_7, %c0_8] : memref<256x256xbf16, #tpu.memory_space<vmem>>, vector<256x256xbf16>
    %cst_9 = arith.constant dense<0.000000e+00> : vector<8x256xf32>
    %14 = tpu.matmul %12, %13, %cst_9 {dimension_numbers = #tpu.dot_dimension_numbers<[1], [0], [0], [1], [0, 0, 1, 1], [], []>} : vector<8x256xbf16>, vector<256x256xbf16>, vector<8x256xf32> -> vector<8x256xf32>
    %c0_10 = arith.constant 0 : index
    %c0_11 = arith.constant 0 : index
    %15 = vector.load %arg6[%c0_10, %c0_11] : memref<1x256xf32, #tpu.memory_space<vmem>>, vector<1x256xf32>
    %16 = vector.broadcast %15 : vector<1x256xf32> to vector<8x256xf32>
    %17 = arith.addf %14, %16 : vector<8x256xf32>
    %cst_12 = arith.constant 0.000000e+00 : f32
    %18 = vector.broadcast %cst_12 : f32 to vector<8x256xf32>
    %19 = arith.cmpf oge, %17, %18 : vector<8x256xf32>
    %cst_13 = arith.constant 2.500000e-01 : f32
    %20 = vector.broadcast %cst_13 : f32 to vector<8x256xf32>
    %21 = arith.mulf %20, %17 : vector<8x256xf32>
    %22 = arith.select %19, %17, %21 : vector<8x256xi1>, vector<8x256xf32>
    %23 = arith.truncf %22 : vector<8x256xf32> to vector<8x256xbf16>
    %c0_14 = arith.constant 0 : index
    %c0_15 = arith.constant 0 : index
    %24 = vector.load %arg7[%c0_14, %c0_15] : memref<256x64xbf16, #tpu.memory_space<vmem>>, vector<256x64xbf16>
    %cst_16 = arith.constant dense<0.000000e+00> : vector<8x64xf32>
    %25 = tpu.matmul %23, %24, %cst_16 {dimension_numbers = #tpu.dot_dimension_numbers<[1], [0], [0], [1], [0, 0, 1, 1], [], []>} : vector<8x256xbf16>, vector<256x64xbf16>, vector<8x64xf32> -> vector<8x64xf32>
    %c0_17 = arith.constant 0 : index
    %c0_18 = arith.constant 0 : index
    %26 = vector.load %arg8[%c0_17, %c0_18] : memref<1x64xf32, #tpu.memory_space<vmem>>, vector<1x64xf32>
    %27 = vector.broadcast %26 : vector<1x64xf32> to vector<8x64xf32>
    %28 = arith.addf %25, %27 : vector<8x64xf32>
    %cst_19 = arith.constant 0.000000e+00 : f32
    %29 = vector.broadcast %cst_19 : f32 to vector<8x64xf32>
    %30 = arith.cmpf oge, %28, %29 : vector<8x64xf32>
    %cst_20 = arith.constant 2.500000e-01 : f32
    %31 = vector.broadcast %cst_20 : f32 to vector<8x64xf32>
    %32 = arith.mulf %31, %28 : vector<8x64xf32>
    %33 = arith.select %30, %28, %32 : vector<8x64xi1>, vector<8x64xf32>
    %c0_21 = arith.constant 0 : index
    %c0_22 = arith.constant 0 : index
    %34 = vector.load %arg1[%c0_21, %c0_22] : memref<8x16xf32, #tpu.memory_space<vmem>>, vector<8x16xf32>
    %35 = arith.truncf %34 : vector<8x16xf32> to vector<8x16xbf16>
    %c0_23 = arith.constant 0 : index
    %c0_24 = arith.constant 0 : index
    %36 = vector.load %arg9[%c0_23, %c0_24] : memref<16x128xbf16, #tpu.memory_space<vmem>>, vector<16x128xbf16>
    %cst_25 = arith.constant dense<0.000000e+00> : vector<8x128xf32>
    %37 = tpu.matmul %35, %36, %cst_25 {dimension_numbers = #tpu.dot_dimension_numbers<[1], [0], [0], [1], [0, 0, 1, 1], [], []>} : vector<8x16xbf16>, vector<16x128xbf16>, vector<8x128xf32> -> vector<8x128xf32>
    %c0_26 = arith.constant 0 : index
    %c0_27 = arith.constant 0 : index
    %38 = vector.load %arg10[%c0_26, %c0_27] : memref<1x128xf32, #tpu.memory_space<vmem>>, vector<1x128xf32>
    %39 = vector.broadcast %38 : vector<1x128xf32> to vector<8x128xf32>
    %40 = arith.addf %37, %39 : vector<8x128xf32>
    %cst_28 = arith.constant 0.000000e+00 : f32
    %41 = vector.broadcast %cst_28 : f32 to vector<8x128xf32>
    %42 = arith.cmpf oge, %40, %41 : vector<8x128xf32>
    %cst_29 = arith.constant 2.500000e-01 : f32
    %43 = vector.broadcast %cst_29 : f32 to vector<8x128xf32>
    %44 = arith.mulf %43, %40 : vector<8x128xf32>
    %45 = arith.select %42, %40, %44 : vector<8x128xi1>, vector<8x128xf32>
    %46 = arith.truncf %45 : vector<8x128xf32> to vector<8x128xbf16>
    %c0_30 = arith.constant 0 : index
    %c0_31 = arith.constant 0 : index
    %47 = vector.load %arg11[%c0_30, %c0_31] : memref<128x128xbf16, #tpu.memory_space<vmem>>, vector<128x128xbf16>
    %cst_32 = arith.constant dense<0.000000e+00> : vector<8x128xf32>
    %48 = tpu.matmul %46, %47, %cst_32 {dimension_numbers = #tpu.dot_dimension_numbers<[1], [0], [0], [1], [0, 0, 1, 1], [], []>} : vector<8x128xbf16>, vector<128x128xbf16>, vector<8x128xf32> -> vector<8x128xf32>
    %c0_33 = arith.constant 0 : index
    %c0_34 = arith.constant 0 : index
    %49 = vector.load %arg12[%c0_33, %c0_34] : memref<1x128xf32, #tpu.memory_space<vmem>>, vector<1x128xf32>
    %50 = vector.broadcast %49 : vector<1x128xf32> to vector<8x128xf32>
    %51 = arith.addf %48, %50 : vector<8x128xf32>
    %cst_35 = arith.constant 0.000000e+00 : f32
    %52 = vector.broadcast %cst_35 : f32 to vector<8x128xf32>
    %53 = arith.cmpf oge, %51, %52 : vector<8x128xf32>
    %cst_36 = arith.constant 2.500000e-01 : f32
    %54 = vector.broadcast %cst_36 : f32 to vector<8x128xf32>
    %55 = arith.mulf %54, %51 : vector<8x128xf32>
    %56 = arith.select %53, %51, %55 : vector<8x128xi1>, vector<8x128xf32>
    %57 = arith.truncf %56 : vector<8x128xf32> to vector<8x128xbf16>
    %c0_37 = arith.constant 0 : index
    %c0_38 = arith.constant 0 : index
    %58 = vector.load %arg13[%c0_37, %c0_38] : memref<128x64xbf16, #tpu.memory_space<vmem>>, vector<128x64xbf16>
    %cst_39 = arith.constant dense<0.000000e+00> : vector<8x64xf32>
    %59 = tpu.matmul %57, %58, %cst_39 {dimension_numbers = #tpu.dot_dimension_numbers<[1], [0], [0], [1], [0, 0, 1, 1], [], []>} : vector<8x128xbf16>, vector<128x64xbf16>, vector<8x64xf32> -> vector<8x64xf32>
    %c0_40 = arith.constant 0 : index
    %c0_41 = arith.constant 0 : index
    %60 = vector.load %arg14[%c0_40, %c0_41] : memref<1x64xf32, #tpu.memory_space<vmem>>, vector<1x64xf32>
    %61 = vector.broadcast %60 : vector<1x64xf32> to vector<8x64xf32>
    %62 = arith.addf %59, %61 : vector<8x64xf32>
    %cst_42 = arith.constant 0.000000e+00 : f32
    %63 = vector.broadcast %cst_42 : f32 to vector<8x64xf32>
    %64 = arith.cmpf oge, %62, %63 : vector<8x64xf32>
    %cst_43 = arith.constant 2.500000e-01 : f32
    %65 = vector.broadcast %cst_43 : f32 to vector<8x64xf32>
    %66 = arith.mulf %65, %62 : vector<8x64xf32>
    %67 = arith.select %64, %62, %66 : vector<8x64xi1>, vector<8x64xf32>
    %c0_44 = arith.constant 0 : index
    %c0_45 = arith.constant 0 : index
    %68 = vector.load %arg2[%c0_44, %c0_45] : memref<8x48xf32, #tpu.memory_space<vmem>>, vector<8x48xf32>
    %69 = arith.truncf %68 : vector<8x48xf32> to vector<8x48xbf16>
    %c0_46 = arith.constant 0 : index
    %c0_47 = arith.constant 0 : index
    %70 = vector.load %arg15[%c0_46, %c0_47] : memref<48x256xbf16, #tpu.memory_space<vmem>>, vector<48x256xbf16>
    %cst_48 = arith.constant dense<0.000000e+00> : vector<8x256xf32>
    %71 = tpu.matmul %69, %70, %cst_48 {dimension_numbers = #tpu.dot_dimension_numbers<[1], [0], [0], [1], [0, 0, 1, 1], [], []>} : vector<8x48xbf16>, vector<48x256xbf16>, vector<8x256xf32> -> vector<8x256xf32>
    %c0_49 = arith.constant 0 : index
    %c0_50 = arith.constant 0 : index
    %72 = vector.load %arg16[%c0_49, %c0_50] : memref<1x256xf32, #tpu.memory_space<vmem>>, vector<1x256xf32>
    %73 = vector.broadcast %72 : vector<1x256xf32> to vector<8x256xf32>
    %74 = arith.addf %71, %73 : vector<8x256xf32>
    %cst_51 = arith.constant 0.000000e+00 : f32
    %75 = vector.broadcast %cst_51 : f32 to vector<8x256xf32>
    %76 = arith.cmpf oge, %74, %75 : vector<8x256xf32>
    %cst_52 = arith.constant 2.500000e-01 : f32
    %77 = vector.broadcast %cst_52 : f32 to vector<8x256xf32>
    %78 = arith.mulf %77, %74 : vector<8x256xf32>
    %79 = arith.select %76, %74, %78 : vector<8x256xi1>, vector<8x256xf32>
    %80 = arith.truncf %79 : vector<8x256xf32> to vector<8x256xbf16>
    %c0_53 = arith.constant 0 : index
    %c0_54 = arith.constant 0 : index
    %81 = vector.load %arg17[%c0_53, %c0_54] : memref<256x256xbf16, #tpu.memory_space<vmem>>, vector<256x256xbf16>
    %cst_55 = arith.constant dense<0.000000e+00> : vector<8x256xf32>
    %82 = tpu.matmul %80, %81, %cst_55 {dimension_numbers = #tpu.dot_dimension_numbers<[1], [0], [0], [1], [0, 0, 1, 1], [], []>} : vector<8x256xbf16>, vector<256x256xbf16>, vector<8x256xf32> -> vector<8x256xf32>
    %c0_56 = arith.constant 0 : index
    %c0_57 = arith.constant 0 : index
    %83 = vector.load %arg18[%c0_56, %c0_57] : memref<1x256xf32, #tpu.memory_space<vmem>>, vector<1x256xf32>
    %84 = vector.broadcast %83 : vector<1x256xf32> to vector<8x256xf32>
    %85 = arith.addf %82, %84 : vector<8x256xf32>
    %cst_58 = arith.constant 0.000000e+00 : f32
    %86 = vector.broadcast %cst_58 : f32 to vector<8x256xf32>
    %87 = arith.cmpf oge, %85, %86 : vector<8x256xf32>
    %cst_59 = arith.constant 2.500000e-01 : f32
    %88 = vector.broadcast %cst_59 : f32 to vector<8x256xf32>
    %89 = arith.mulf %88, %85 : vector<8x256xf32>
    %90 = arith.select %87, %85, %89 : vector<8x256xi1>, vector<8x256xf32>
    %91 = arith.truncf %90 : vector<8x256xf32> to vector<8x256xbf16>
    %c0_60 = arith.constant 0 : index
    %c0_61 = arith.constant 0 : index
    %92 = vector.load %arg19[%c0_60, %c0_61] : memref<256x128xbf16, #tpu.memory_space<vmem>>, vector<256x128xbf16>
    %cst_62 = arith.constant dense<0.000000e+00> : vector<8x128xf32>
    %93 = tpu.matmul %91, %92, %cst_62 {dimension_numbers = #tpu.dot_dimension_numbers<[1], [0], [0], [1], [0, 0, 1, 1], [], []>} : vector<8x256xbf16>, vector<256x128xbf16>, vector<8x128xf32> -> vector<8x128xf32>
    %c0_63 = arith.constant 0 : index
    %c0_64 = arith.constant 0 : index
    %94 = vector.load %arg20[%c0_63, %c0_64] : memref<1x128xf32, #tpu.memory_space<vmem>>, vector<1x128xf32>
    %95 = vector.broadcast %94 : vector<1x128xf32> to vector<8x128xf32>
    %96 = arith.addf %93, %95 : vector<8x128xf32>
    %cst_65 = arith.constant 0.000000e+00 : f32
    %97 = vector.broadcast %cst_65 : f32 to vector<8x128xf32>
    %98 = arith.cmpf oge, %96, %97 : vector<8x128xf32>
    %cst_66 = arith.constant 2.500000e-01 : f32
    %99 = vector.broadcast %cst_66 : f32 to vector<8x128xf32>
    %100 = arith.mulf %99, %96 : vector<8x128xf32>
    %101 = arith.select %98, %96, %100 : vector<8x128xi1>, vector<8x128xf32>
    %102 = arith.truncf %33 : vector<8x64xf32> to vector<8x64xbf16>
    %c0_67 = arith.constant 0 : index
    %c0_68 = arith.constant 0 : index
    %103 = vector.load %arg21[%c0_67, %c0_68] : memref<64x128xbf16, #tpu.memory_space<vmem>>, vector<64x128xbf16>
    %cst_69 = arith.constant dense<0.000000e+00> : vector<8x128xf32>
    %104 = tpu.matmul %102, %103, %cst_69 {dimension_numbers = #tpu.dot_dimension_numbers<[1], [0], [0], [1], [0, 0, 1, 1], [], []>} : vector<8x64xbf16>, vector<64x128xbf16>, vector<8x128xf32> -> vector<8x128xf32>
    %105 = arith.truncf %67 : vector<8x64xf32> to vector<8x64xbf16>
    %c0_70 = arith.constant 0 : index
    %c0_71 = arith.constant 0 : index
    %106 = vector.load %arg22[%c0_70, %c0_71] : memref<64x128xbf16, #tpu.memory_space<vmem>>, vector<64x128xbf16>
    %cst_72 = arith.constant dense<0.000000e+00> : vector<8x128xf32>
    %107 = tpu.matmul %105, %106, %cst_72 {dimension_numbers = #tpu.dot_dimension_numbers<[1], [0], [0], [1], [0, 0, 1, 1], [], []>} : vector<8x64xbf16>, vector<64x128xbf16>, vector<8x128xf32> -> vector<8x128xf32>
    %108 = arith.addf %104, %107 : vector<8x128xf32>
    %109 = arith.truncf %101 : vector<8x128xf32> to vector<8x128xbf16>
    %c0_73 = arith.constant 0 : index
    %c0_74 = arith.constant 0 : index
    %110 = vector.load %arg23[%c0_73, %c0_74] : memref<128x128xbf16, #tpu.memory_space<vmem>>, vector<128x128xbf16>
    %cst_75 = arith.constant dense<0.000000e+00> : vector<8x128xf32>
    %111 = tpu.matmul %109, %110, %cst_75 {dimension_numbers = #tpu.dot_dimension_numbers<[1], [0], [0], [1], [0, 0, 1, 1], [], []>} : vector<8x128xbf16>, vector<128x128xbf16>, vector<8x128xf32> -> vector<8x128xf32>
    %112 = arith.addf %108, %111 : vector<8x128xf32>
    %c0_76 = arith.constant 0 : index
    %c0_77 = arith.constant 0 : index
    %113 = vector.load %arg24[%c0_76, %c0_77] : memref<1x128xf32, #tpu.memory_space<vmem>>, vector<1x128xf32>
    %114 = vector.broadcast %113 : vector<1x128xf32> to vector<8x128xf32>
    %115 = arith.addf %112, %114 : vector<8x128xf32>
    %cst_78 = arith.constant 0.000000e+00 : f32
    %116 = vector.broadcast %cst_78 : f32 to vector<8x128xf32>
    %117 = arith.cmpf oge, %115, %116 : vector<8x128xf32>
    %cst_79 = arith.constant 2.500000e-01 : f32
    %118 = vector.broadcast %cst_79 : f32 to vector<8x128xf32>
    %119 = arith.mulf %118, %115 : vector<8x128xf32>
    %120 = arith.select %117, %115, %119 : vector<8x128xi1>, vector<8x128xf32>
    %121 = arith.truncf %120 : vector<8x128xf32> to vector<8x128xbf16>
    %c0_80 = arith.constant 0 : index
    %c0_81 = arith.constant 0 : index
    %122 = vector.load %arg25[%c0_80, %c0_81] : memref<128x128xbf16, #tpu.memory_space<vmem>>, vector<128x128xbf16>
    %cst_82 = arith.constant dense<0.000000e+00> : vector<8x128xf32>
    %123 = tpu.matmul %121, %122, %cst_82 {dimension_numbers = #tpu.dot_dimension_numbers<[1], [0], [0], [1], [0, 0, 1, 1], [], []>} : vector<8x128xbf16>, vector<128x128xbf16>, vector<8x128xf32> -> vector<8x128xf32>
    %c0_83 = arith.constant 0 : index
    %c0_84 = arith.constant 0 : index
    %124 = vector.load %arg26[%c0_83, %c0_84] : memref<1x128xf32, #tpu.memory_space<vmem>>, vector<1x128xf32>
    %125 = vector.broadcast %124 : vector<1x128xf32> to vector<8x128xf32>
    %126 = arith.addf %123, %125 : vector<8x128xf32>
    %cst_85 = arith.constant 0.000000e+00 : f32
    %127 = vector.broadcast %cst_85 : f32 to vector<8x128xf32>
    %128 = arith.cmpf oge, %126, %127 : vector<8x128xf32>
    %cst_86 = arith.constant 2.500000e-01 : f32
    %129 = vector.broadcast %cst_86 : f32 to vector<8x128xf32>
    %130 = arith.mulf %129, %126 : vector<8x128xf32>
    %131 = arith.select %128, %126, %130 : vector<8x128xi1>, vector<8x128xf32>
    %132 = arith.truncf %131 : vector<8x128xf32> to vector<8x128xbf16>
    %c0_87 = arith.constant 0 : index
    %c0_88 = arith.constant 0 : index
    %133 = vector.load %arg27[%c0_87, %c0_88] : memref<128x64xbf16, #tpu.memory_space<vmem>>, vector<128x64xbf16>
    %cst_89 = arith.constant dense<0.000000e+00> : vector<8x64xf32>
    %134 = tpu.matmul %132, %133, %cst_89 {dimension_numbers = #tpu.dot_dimension_numbers<[1], [0], [0], [1], [0, 0, 1, 1], [], []>} : vector<8x128xbf16>, vector<128x64xbf16>, vector<8x64xf32> -> vector<8x64xf32>
    %c0_90 = arith.constant 0 : index
    %c0_91 = arith.constant 0 : index
    %135 = vector.load %arg28[%c0_90, %c0_91] : memref<1x64xf32, #tpu.memory_space<vmem>>, vector<1x64xf32>
    %136 = vector.broadcast %135 : vector<1x64xf32> to vector<8x64xf32>
    %137 = arith.addf %134, %136 : vector<8x64xf32>
    %cst_92 = arith.constant 0.000000e+00 : f32
    %138 = vector.broadcast %cst_92 : f32 to vector<8x64xf32>
    %139 = arith.cmpf oge, %137, %138 : vector<8x64xf32>
    %cst_93 = arith.constant 2.500000e-01 : f32
    %140 = vector.broadcast %cst_93 : f32 to vector<8x64xf32>
    %141 = arith.mulf %140, %137 : vector<8x64xf32>
    %142 = arith.select %139, %137, %141 : vector<8x64xi1>, vector<8x64xf32>
    %143 = arith.truncf %142 : vector<8x64xf32> to vector<8x64xbf16>
    %c0_94 = arith.constant 0 : index
    %c0_95 = arith.constant 0 : index
    %144 = vector.load %arg29[%c0_94, %c0_95] : memref<64x1xbf16, #tpu.memory_space<vmem>>, vector<64x1xbf16>
    %cst_96 = arith.constant dense<0.000000e+00> : vector<8x1xf32>
    %145 = tpu.matmul %143, %144, %cst_96 {dimension_numbers = #tpu.dot_dimension_numbers<[1], [0], [0], [1], [0, 0, 1, 1], [], []>} : vector<8x64xbf16>, vector<64x1xbf16>, vector<8x1xf32> -> vector<8x1xf32>
    %c0_97 = arith.constant 0 : index
    %c0_98 = arith.constant 0 : index
    %146 = vector.load %arg30[%c0_97, %c0_98] : memref<1x1xf32, #tpu.memory_space<vmem>>, vector<1x1xf32>
    %147 = vector.broadcast %146 : vector<1x1xf32> to vector<8x1xf32>
    %148 = arith.addf %145, %147 : vector<8x1xf32>
    %c0_99 = arith.constant 0 : index
    %c0_100 = arith.constant 0 : index
    %149 = vector.load %arg31[%c0_99, %c0_100] : memref<8x1xf32, #tpu.memory_space<vmem>>, vector<8x1xf32>
    tpu.vector_store %arg31[%c0_99, %c0_100], %148 {strides = array<i32>} : memref<8x1xf32, #tpu.memory_space<vmem>>, vector<8x1xf32>,
    return
  }
}

</mosaic_0001>

<bundles_post_ra>
// kernel: mlp_w_mutation_forward.1
= control target key start
LH: loop header
LB: loop body
LE: loop exit
PB: predicated region body
PF: predicated region fallthrough
CT: control target
= control target key end

     0   :  { %s3355_s6 = smov 1   ;;  %s3356_s10 = smov 2   ;;  %s3879_s0 = inlined_call_operand.smem [shape: u32[32], index: -1, kind: input, shape index: {}] }
   0x1   :  { %s3417_s5 = sld [smem:[%s3879_s0]]   ;;  %s3357_s14 = smov 3  }
   0x2   :  { %s3422_s9 = sld [smem:[%s3879_s0 + %s3355_s6]]   ;;  %s3358_s18 = smov 4  }
   0x3   :  { %s3427_s13 = sld [smem:[%s3879_s0 + %s3356_s10]]   ;;  %s3359_s22 = smov 5  }
   0x4   :  { %s3432_s17 = sld [smem:[%s3879_s0 + %s3357_s14]]   ;;  %s3360_s26 = smov 6  }
   0x5   :  { %s3437_s21 = sld [smem:[%s3879_s0 + %s3358_s18]]   ;;  %s3361_s30 = smov 7  }
   0x6   :  { %s3442_s25 = sld [smem:[%s3879_s0 + %s3359_s22]]   ;;  %s3362_s4 = smov 8  }
   0x7   :  { %3888 = sst [smem:[#allocation37_spill]] %s3417_s5  ;;  %s3363_s10 = smov 9  }
   0x8   :  { %3889 = sst [smem:[#allocation38_spill]] %s3422_s9  ;;  %s3364_s15 = smov 10  }
   0x9   :  { %3890 = sst [smem:[#allocation39_spill]] %s3427_s13  ;;  %s3365_s20 = smov 11  }
   0xa   :  { %s3447_s29 = sld [smem:[%s3879_s0 + %s3360_s26]]   ;;  %s3366_s26 = smov 12  }
   0xb   :  { %s3452_s3 = sld [smem:[%s3879_s0 + %s3361_s30]]   ;;  %s3367_s1 = smov 13  }
   0xc   :  { %3891 = sst [smem:[#allocation40_spill]] %s3442_s25  ;;  %s3368_s7 = smov 14  }
   0xd   :  { %s3457_s8 = sld [smem:[%s3879_s0 + %s3362_s4]]   ;;  %s3370_s22 = smov 16  }
   0xe   :  { %s3462_s14 = sld [smem:[%s3879_s0 + %s3363_s10]]   ;;  %s3371_s28 = smov 17  }
   0xf   :  { %s3467_s19 = sld [smem:[%s3879_s0 + %s3364_s15]]   ;;  %s3369_s15 = smov 15  }
  0x10   :  { %s3472_s24 = sld [smem:[%s3879_s0 + %s3365_s20]]   ;;  %s3385_s16 = smov 31  }
  0x11   :  { %3892 = sst [smem:[#allocation41_spill]] %s3452_s3 }
  0x12   :  { %s3477_s30 = sld [smem:[%s3879_s0 + %s3366_s26]]  }
  0x13   :  { %3893 = sst [smem:[#allocation42_spill]] %s3457_s8 }
  0x14   :  { %s3482_s6 = sld [smem:[%s3879_s0 + %s3367_s1]]  }
  0x15   :  { %s3487_s12 = sld [smem:[%s3879_s0 + %s3368_s7]]   ;;  %s3372_s7 = smov 18  }
  0x16   :  { %s3492_s20 = sld [smem:[%s3879_s0 + %s3369_s15]]   ;;  %s3373_s15 = smov 19  }
  0x17   :  { %s3497_s27 = sld [smem:[%s3879_s0 + %s3370_s22]]   ;;  %s3374_s22 = smov 20  }
  0x18   :  { %s3502_s4 = sld [smem:[%s3879_s0 + %s3371_s28]]   ;;  %s3375_s28 = smov 21  }
  0x19   :  { %s3507_s8 = sld [smem:[%s3879_s0 + %s3372_s7]]   ;;  %s3376_s7 = smov 22  }
  0x1a   :  { %3894 = sst [smem:[#allocation43_spill]] %s3482_s6 }
  0x1b   :  { %s3512_s13 = sld [smem:[%s3879_s0 + %s3373_s15]]   ;;  %s3377_s15 = smov 23  }
  0x1c   :  { %s3517_s6 = sld [smem:[%s3879_s0 + %s3374_s22]]   ;;  %s3378_s22 = smov 24  }
  0x1d   :  { %s3522_s9 = sld [smem:[%s3879_s0 + %s3375_s28]]   ;;  %s3379_s28 = smov 25  }
  0x1e   :  { %s3527_s3 = sld [smem:[%s3879_s0 + %s3376_s7]]   ;;  %s3380_s7 = smov 26  }
  0x1f   :  { %s3542_s25 = sld [smem:[%s3879_s0 + %s3379_s28]]   ;;  %s3383_s28 = smov 29  }
  0x20   :  { %s3547_s5 = sld [smem:[%s3879_s0 + %s3380_s7]]   ;;  %s3384_s7 = smov 30  }
  0x21   :  { %3895 = sst [smem:[#allocation44_spill]] %s3512_s13 }
  0x22   :  { %3896 = sst [smem:[#allocation45_spill]] %s3517_s6 }
  0x23   :  { %s3532_s13 = sld [smem:[%s3879_s0 + %s3377_s15]]   ;;  %s3381_s15 = smov 27  }
  0x24   :  { %s3537_s6 = sld [smem:[%s3879_s0 + %s3378_s22]]   ;;  %s3382_s22 = smov 28  }
  0x25   :  { %3899 = sst [smem:[#allocation48_spill]] %s3542_s25 }
  0x26   :  { %3900 = sst [smem:[#allocation49_spill]] %s3547_s5 }
  0x27   :  { %s3562_s25 = sld [smem:[%s3879_s0 + %s3383_s28]]  }
  0x28   :  { %s2311_s5 = sld [smem:[%s3879_s0 + %s3384_s7]]  }
  0x29   :  { %3897 = sst [smem:[#allocation46_spill]] %s3532_s13 }
  0x2a   :  { %3898 = sst [smem:[#allocation47_spill]] %s3537_s6 }
  0x2b   :  { %s3552_s13 = sld [smem:[%s3879_s0 + %s3381_s15]]  }
  0x2c   :  { %s3557_s6 = sld [smem:[%s3879_s0 + %s3382_s22]]  }
  0x2e   :  { %v68_v0 = vstv %s2311_s5 }
  0x2f   :  { %69 = vst [vmem:[#allocation2] sm:$0x1] %v68_v0 }
  0x31   :  { %3901 = sst [smem:[#allocation50_spill]] %s3552_s13 }
  0x32   :  { %s3570_s13 = sld [smem:[%s3879_s0 + %s3385_s16]]  }
  0x33   :  { %70 = vsyncpa [#allocation4], 0 }
  0x34   :  { %71 = vsyncpa [#allocation6], 0 }
  0x35   :  { %72 = vsyncpa [#allocation9], 0 }
  0x36   :  { %73 = vsyncpa [#allocation12], 0 }
  0x37   :  { %74 = vsyncpa [#allocation15], 0 }
  0x38   :  { %75 = vsyncpa [#allocation18], 0 }
  0x39   :  { %76 = vsyncpa [#allocation21], 0 }
  0x3a   :  { %77 = vsyncpa [#allocation24], 0 }
  0x3b   :  { %78 = vsyncpa [#allocation27], 0  ;;  %s3386_s22 = smov [#allocation5]   ;;  %s3387_s26 = smov [#allocation8]  }
  0x3c   :  { %s103_s23 = sshll.u32 %s3386_s22, 4  ;;  %s128_s28 = sshll.u32 %s3387_s26, 4  ;;  %s104_s23 = int_to_ptr.vmem [resolvable:$true] %s103_s23  ;;  %s3572_s28 = int_to_ptr.vmem [resolvable:$true] %s128_s28 }
  0x3d   :  { %s2985_s0 = scalar_lea.hbm %s3437_s21, 32 }
  0x3e   :  { %p2986_p0 = scmp.ne.s32.totalorder %s3437_s21, %s2985_s0  ;;  %p2989_p1 = scmp.lt.u32.totalorder %s2985_s0, %s3437_s21 }
  0x40   :  { %p2991_p2 = pnand %p2989_p1, %p2986_p0 }
  0x42   :  { %2994 = shalt.err (!%p2991_p2)
}
  0x43   :  { %s2995_s5 = scalar_lea.vmem %s104_s23, 32  ;;  %p3000_p4 = scmp.lt.s32.totalorder %s104_s23, %s104_s23 }
  0x44   :  { %p2996_p3 = scmp.ne.s32.totalorder %s104_s23, %s2995_s5  ;;  %p3001_p5 = scmp.lt.s32.totalorder %s2995_s5, %s2995_s5 }
  0x46   :  { %p3002_p6 = por %p3001_p5, %p3000_p4 }
  0x48   :  { %p3003_p7 = pnand %p3002_p6, %p2996_p3 }
  0x4a   :  { %3006 = shalt.err (!%p3003_p7)
}
  0x4b   :  { %106 = dma.hbm_to_vmem [thread:$0]  %s3437_s21, 32, %s104_s23, [#allocation6]  }
  0x4c   :  { %s3007_s1 = scalar_lea.hbm %s3462_s14, 128 }
  0x4d   :  { %p3008_p8 = scmp.ne.s32.totalorder %s3462_s14, %s3007_s1  ;;  %p3011_p9 = scmp.lt.u32.totalorder %s3007_s1, %s3462_s14 }
  0x4f   :  { %p3013_p10 = pnand %p3011_p9, %p3008_p8 }
  0x51   :  { %3016 = shalt.err (!%p3013_p10)
}
  0x52   :  { %s3017_s2 = scalar_lea.vmem %s3572_s28, 128  ;;  %p3022_p12 = scmp.lt.s32.totalorder %s3572_s28, %s3572_s28 }
  0x53   :  { %p3018_p11 = scmp.ne.s32.totalorder %s3572_s28, %s3017_s2  ;;  %p3023_p13 = scmp.lt.s32.totalorder %s3017_s2, %s3017_s2 }
  0x55   :  { %p3024_p0 = por %p3023_p13, %p3022_p12 }
  0x57   :  { %p3025_p1 = pnand %p3024_p0, %p3018_p11 }
  0x59   :  { %3028 = shalt.err (!%p3025_p1)
}
  0x5a   :  { %s3388_s7 = smov 64   ;;  %s3389_s21 = smov 4  }
  0x5b   :  { %134 = dma.hbm_to_vmem [thread:$0]  %s3462_s14, 128, %s3572_s28, [#allocation9], %s3388_s7, %s3388_s7, %s3389_s21  }
  0x5c   :  { %s3390_s10 = smov [#allocation11]   ;;  %s3391_s16 = smov [#allocation14]  }
  0x5d   :  { %s150_s11 = sshll.u32 %s3390_s10, 4  ;;  %s175_s15 = sshll.u32 %s3391_s16, 4  ;;  %s151_s11 = int_to_ptr.vmem [resolvable:$true] %s150_s11  ;;  %s176_s15 = int_to_ptr.vmem [resolvable:$true] %s175_s15 }
  0x5e   :  { %s3029_s18 = scalar_lea.hbm %s3472_s24, 1024 }
  0x5f   :  { %p3030_p2 = scmp.ne.s32.totalorder %s3472_s24, %s3029_s18  ;;  %p3033_p3 = scmp.lt.u32.totalorder %s3029_s18, %s3472_s24 }
  0x61   :  { %p3035_p4 = pnand %p3033_p3, %p3030_p2 }
  0x63   :  { %3038 = shalt.err (!%p3035_p4)
}
  0x64   :  { %s3039_s22 = scalar_lea.vmem %s151_s11, 1024  ;;  %p3044_p6 = scmp.lt.s32.totalorder %s151_s11, %s151_s11 }
  0x65   :  { %p3040_p5 = scmp.ne.s32.totalorder %s151_s11, %s3039_s22  ;;  %p3045_p7 = scmp.lt.s32.totalorder %s3039_s22, %s3039_s22 }
  0x67   :  { %p3046_p8 = por %p3045_p7, %p3044_p6 }
  0x69   :  { %p3047_p9 = pnand %p3046_p8, %p3040_p5 }
  0x6b   :  { %3050 = shalt.err (!%p3047_p9)
}
  0x6c   :  { %156 = dma.hbm_to_vmem [thread:$0]  %s3472_s24, 1024, %s151_s11, [#allocation12], %s3388_s7, %s3388_s7, %s3389_s21  }
  0x6d   :  { %s3051_s14 = scalar_lea.hbm %s3487_s12, 16 }
  0x6e   :  { %p3052_p10 = scmp.ne.s32.totalorder %s3487_s12, %s3051_s14  ;;  %p3055_p11 = scmp.lt.u32.totalorder %s3051_s14, %s3487_s12 }
  0x70   :  { %p3057_p12 = pnand %p3055_p11, %p3052_p10 }
  0x72   :  { %3060 = shalt.err (!%p3057_p12)
}
  0x73   :  { %s3061_s23 = scalar_lea.vmem %s176_s15, 16  ;;  %s3065_s26 = scalar_lea.vmem %s176_s15, 32 }
  0x74   :  { %p3062_p13 = scmp.ne.s32.totalorder %s176_s15, %s3061_s23  ;;  %p3066_p0 = scmp.lt.s32.totalorder %s176_s15, %s176_s15 }
  0x75   :  { %p3067_p1 = scmp.lt.s32.totalorder %s3065_s26, %s3061_s23 }
  0x77   :  { %p3068_p2 = por %p3067_p1, %p3066_p0 }
  0x79   :  { %p3069_p3 = pnand %p3068_p2, %p3062_p13 }
  0x7b   :  { %3072 = shalt.err (!%p3069_p3)
}
  0x7c   :  { %178 = dma.hbm_to_vmem [thread:$0]  %s3487_s12, 16, %s176_s15, [#allocation15]  }
  0x7d   :  { %s3392_s28 = smov [#allocation17]   ;;  %s3393_s0 = smov [#allocation20]  }
  0x7e   :  { %s197_s24 = sshll.u32 %s3392_s28, 4  ;;  %s219_s5 = sshll.u32 %s3393_s0, 4  ;;  %s198_s24 = int_to_ptr.vmem [resolvable:$true] %s197_s24  ;;  %s220_s5 = int_to_ptr.vmem [resolvable:$true] %s219_s5 }
  0x7f   :  { %s3073_s1 = scalar_lea.hbm %s3497_s27, 32 }
  0x80   :  { %p3074_p4 = scmp.ne.s32.totalorder %s3497_s27, %s3073_s1  ;;  %p3077_p5 = scmp.lt.u32.totalorder %s3073_s1, %s3497_s27 }
  0x82   :  { %p3079_p6 = pnand %p3077_p5, %p3074_p4 }
  0x84   :  { %3082 = shalt.err (!%p3079_p6)
}
  0x85   :  { %s3083_s2 = scalar_lea.vmem %s198_s24, 32  ;;  %p3088_p8 = scmp.lt.s32.totalorder %s198_s24, %s198_s24 }
  0x86   :  { %p3084_p7 = scmp.ne.s32.totalorder %s198_s24, %s3083_s2  ;;  %p3089_p9 = scmp.lt.s32.totalorder %s3083_s2, %s3083_s2 }
  0x88   :  { %p3090_p10 = por %p3089_p9, %p3088_p8 }
  0x8a   :  { %p3091_p11 = pnand %p3090_p10, %p3084_p7 }
  0x8c   :  { %3094 = shalt.err (!%p3091_p11)
}
  0x8d   :  { %200 = dma.hbm_to_vmem [thread:$0]  %s3497_s27, 32, %s198_s24, [#allocation18]  }
  0x8e   :  { %s3095_s12 = scalar_lea.hbm %s3507_s8, 32 }
  0x8f   :  { %p3096_p12 = scmp.ne.s32.totalorder %s3507_s8, %s3095_s12  ;;  %p3099_p13 = scmp.lt.u32.totalorder %s3095_s12, %s3507_s8 }
  0x91   :  { %p3101_p0 = pnand %p3099_p13, %p3096_p12 }
  0x93   :  { %3104 = shalt.err (!%p3101_p0)
}
  0x94   :  { %s3105_s10 = scalar_lea.vmem %s220_s5, 32  ;;  %p3110_p2 = scmp.lt.s32.totalorder %s220_s5, %s220_s5 }
  0x95   :  { %p3106_p1 = scmp.ne.s32.totalorder %s220_s5, %s3105_s10  ;;  %p3111_p3 = scmp.lt.s32.totalorder %s3105_s10, %s3105_s10 }
  0x97   :  { %p3112_p4 = por %p3111_p3, %p3110_p2 }
  0x99   :  { %p3113_p5 = pnand %p3112_p4, %p3106_p1 }
  0x9b   :  { %3116 = shalt.err (!%p3113_p5)
}
  0x9c   :  { %222 = dma.hbm_to_vmem [thread:$0]  %s3507_s8, 32, %s220_s5, [#allocation21]  }
  0x9d   :  { %s3394_s11 = smov [#allocation23]   ;;  %s3395_s27 = smov [#allocation3]  }
  0x9e   :  { %s244_s16 = sshll.u32 %s3394_s11, 4  ;;  %s90_s15 = sshll.u32 %s3395_s27, 4  ;;  %s245_s16 = int_to_ptr.vmem [resolvable:$true] %s244_s16  ;;  %s3609_s15 = int_to_ptr.vmem [resolvable:$true] %s90_s15 }
  0x9f   :  { %s3117_s18 = scalar_lea.hbm %s3527_s3, 512 }
  0xa0   :  { %p3118_p6 = scmp.ne.s32.totalorder %s3527_s3, %s3117_s18  ;;  %p3121_p7 = scmp.lt.u32.totalorder %s3117_s18, %s3527_s3 }
  0xa2   :  { %p3123_p8 = pnand %p3121_p7, %p3118_p6 }
  0xa4   :  { %3126 = shalt.err (!%p3123_p8)
}
  0xa5   :  { %s3127_s22 = scalar_lea.vmem %s245_s16, 512  ;;  %p3132_p10 = scmp.lt.s32.totalorder %s245_s16, %s245_s16 }
  0xa6   :  { %p3128_p9 = scmp.ne.s32.totalorder %s245_s16, %s3127_s22  ;;  %p3133_p11 = scmp.lt.s32.totalorder %s3127_s22, %s3127_s22 }
  0xa8   :  { %p3134_p12 = por %p3133_p11, %p3132_p10 }
  0xaa   :  { %p3135_p13 = pnand %p3134_p12, %p3128_p9 }
  0xac   :  { %3138 = shalt.err (!%p3135_p13)
}
  0xad   :  { %250 = dma.hbm_to_vmem [thread:$0]  %s3527_s3, 512, %s245_s16, [#allocation24], %s3388_s7, %s3388_s7, %s3389_s21  }
  0xae   :  { %s3139_s8 = scalar_lea.hbm %s3432_s17, 512 }
  0xaf   :  { %p3140_p0 = scmp.ne.s32.totalorder %s3432_s17, %s3139_s8  ;;  %p3143_p1 = scmp.lt.u32.totalorder %s3139_s8, %s3432_s17 }
  0xb1   :  { %p3145_p2 = pnand %p3143_p1, %p3140_p0 }
  0xb3   :  { %3148 = shalt.err (!%p3145_p2)
}
  0xb4   :  { %s3149_s14 = scalar_lea.vmem %s3609_s15, 512  ;;  %p3154_p4 = scmp.lt.s32.totalorder %s3609_s15, %s3609_s15 }
  0xb5   :  { %p3150_p3 = scmp.ne.s32.totalorder %s3609_s15, %s3149_s14  ;;  %p3155_p5 = scmp.lt.s32.totalorder %s3149_s14, %s3149_s14 }
  0xb7   :  { %p3156_p6 = por %p3155_p5, %p3154_p4 }
  0xb9   :  { %p3157_p7 = pnand %p3156_p6, %p3150_p3 }
  0xbb   :  { %3160 = shalt.err (!%p3157_p7)
}
  0xbc   :  { %s3396_s23 = smov 128   ;;  %s3397_s3 = smov 8  }
  0xbd   :  { %96 = dma.hbm_to_vmem [thread:$0]  %s3432_s17, 512, %s3609_s15, [#allocation4], %s3396_s23, %s3396_s23, %s3397_s3  }
  0xbe   :  { %s3398_s26 = smov [#allocation7]   ;;  %s3399_s24 = smov [#allocation10]  }
  0xbf   :  { %s115_s28 = sshll.u32 %s3398_s26, 4  ;;  %s141_s0 = sshll.u32 %s3399_s24, 4  ;;  %s116_s28 = int_to_ptr.vmem [resolvable:$true] %s115_s28  ;;  %s142_s0 = int_to_ptr.vmem [resolvable:$true] %s141_s0 }
  0xc0   :  { %s3161_s5 = scalar_lea.hbm %s3447_s29, 32 }
  0xc1   :  { %p3162_p8 = scmp.ne.s32.totalorder %s3447_s29, %s3161_s5  ;;  %p3165_p9 = scmp.lt.u32.totalorder %s3161_s5, %s3447_s29 }
  0xc3   :  { %p3167_p10 = pnand %p3165_p9, %p3162_p8 }
  0xc5   :  { %3170 = shalt.err (!%p3167_p10)
}
  0xc6   :  { %s3171_s1 = scalar_lea.vmem %s116_s28, 32  ;;  %p3176_p12 = scmp.lt.s32.totalorder %s116_s28, %s116_s28 }
  0xc7   :  { %p3172_p11 = scmp.ne.s32.totalorder %s116_s28, %s3171_s1  ;;  %p3177_p13 = scmp.lt.s32.totalorder %s3171_s1, %s3171_s1 }
  0xc9   :  { %p3178_p0 = por %p3177_p13, %p3176_p12 }
  0xcb   :  { %p3179_p1 = pnand %p3178_p0, %p3172_p11 }
  0xcd   :  { %3182 = shalt.err (!%p3179_p1)
}
  0xce   :  { %118 = dma.hbm_to_vmem [thread:$0]  %s3447_s29, 32, %s116_s28, [#allocation6]  }
  0xcf   :  { %s3183_s17 = scalar_lea.hbm %s3467_s19, 16 }
  0xd0   :  { %p3184_p2 = scmp.ne.s32.totalorder %s3467_s19, %s3183_s17  ;;  %p3187_p3 = scmp.lt.u32.totalorder %s3183_s17, %s3467_s19 }
  0xd2   :  { %p3189_p4 = pnand %p3187_p3, %p3184_p2 }
  0xd4   :  { %3192 = shalt.err (!%p3189_p4)
}
  0xd5   :  { %s3193_s2 = scalar_lea.vmem %s142_s0, 16  ;;  %s3197_s12 = scalar_lea.vmem %s142_s0, 32 }
  0xd6   :  { %p3194_p5 = scmp.ne.s32.totalorder %s142_s0, %s3193_s2  ;;  %p3198_p6 = scmp.lt.s32.totalorder %s142_s0, %s142_s0 }
  0xd7   :  { %p3199_p7 = scmp.lt.s32.totalorder %s3197_s12, %s3193_s2 }
  0xd9   :  { %p3200_p8 = por %p3199_p7, %p3198_p6 }
  0xdb   :  { %p3201_p9 = pnand %p3200_p8, %p3194_p5 }
  0xdd   :  { %3204 = shalt.err (!%p3201_p9)
}
  0xde   :  { %144 = dma.hbm_to_vmem [thread:$0]  %s3467_s19, 16, %s142_s0, [#allocation9]  }
  0xdf   :  { %s3400_s10 = smov [#allocation13]   ;;  %s3401_s11 = smov [#allocation16]  }
  0xe0   :  { %s163_s29 = sshll.u32 %s3400_s10, 4  ;;  %s184_s16 = sshll.u32 %s3401_s11, 4  ;;  %s164_s29 = int_to_ptr.vmem [resolvable:$true] %s163_s29  ;;  %s3638_s16 = int_to_ptr.vmem [resolvable:$true] %s184_s16 }
  0xe1   :  { %s3205_s27 = scalar_lea.hbm %s3477_s30, 16 }
  0xe2   :  { %p3206_p10 = scmp.ne.s32.totalorder %s3477_s30, %s3205_s27  ;;  %p3209_p11 = scmp.lt.u32.totalorder %s3205_s27, %s3477_s30 }
  0xe4   :  { %p3211_p12 = pnand %p3209_p11, %p3206_p10 }
  0xe6   :  { %3214 = shalt.err (!%p3211_p12)
}
  0xe7   :  { %s3215_s15 = scalar_lea.vmem %s164_s29, 16  ;;  %s3219_s18 = scalar_lea.vmem %s164_s29, 32 }
  0xe8   :  { %p3216_p13 = scmp.ne.s32.totalorder %s164_s29, %s3215_s15  ;;  %p3220_p0 = scmp.lt.s32.totalorder %s164_s29, %s164_s29 }
  0xe9   :  { %p3221_p1 = scmp.lt.s32.totalorder %s3219_s18, %s3215_s15 }
  0xeb   :  { %p3222_p2 = por %p3221_p1, %p3220_p0 }
  0xed   :  { %p3223_p3 = pnand %p3222_p2, %p3216_p13 }
  0xef   :  { %3226 = shalt.err (!%p3223_p3)
}
  0xf0   :  { %166 = dma.hbm_to_vmem [thread:$0]  %s3477_s30, 16, %s164_s29, [#allocation12]  }
  0xf1   :  { %s3227_s19 = scalar_lea.hbm %s3492_s20, 768 }
  0xf2   :  { %p3228_p4 = scmp.ne.s32.totalorder %s3492_s20, %s3227_s19  ;;  %p3231_p5 = scmp.lt.u32.totalorder %s3227_s19, %s3492_s20 }
  0xf4   :  { %p3233_p6 = pnand %p3231_p5, %p3228_p4 }
  0xf6   :  { %3236 = shalt.err (!%p3233_p6)
}
  0xf7   :  { %s3237_s22 = scalar_lea.vmem %s3638_s16, 768  ;;  %p3242_p8 = scmp.lt.s32.totalorder %s3638_s16, %s3638_s16 }
  0xf8   :  { %p3238_p7 = scmp.ne.s32.totalorder %s3638_s16, %s3237_s22  ;;  %p3243_p9 = scmp.lt.s32.totalorder %s3237_s22, %s3237_s22 }
  0xfa   :  { %p3244_p10 = por %p3243_p9, %p3242_p8 }
  0xfc   :  { %p3245_p11 = pnand %p3244_p10, %p3238_p7 }
  0xfe   :  { %3248 = shalt.err (!%p3245_p11)
}
  0xff   :  { %190 = dma.hbm_to_vmem [thread:$0]  %s3492_s20, 768, %s3638_s16, [#allocation15], %s3396_s23, %s3396_s23, %s3397_s3  }
 0x100   :  { %s3402_s30 = smov [#allocation19]   ;;  %s3403_s14 = smov [#allocation22]  }
 0x101   :  { %s206_s8 = sshll.u32 %s3402_s30, 4  ;;  %s232_s26 = sshll.u32 %s3403_s14, 4  ;;  %s207_s8 = int_to_ptr.vmem [resolvable:$true] %s206_s8  ;;  %s3656_s26 = int_to_ptr.vmem [resolvable:$true] %s232_s26 }
 0x102   :  { %s3249_s28 = scalar_lea.hbm %s3502_s4, 4096 }
 0x103   :  { %p3250_p12 = scmp.ne.s32.totalorder %s3502_s4, %s3249_s28  ;;  %p3253_p13 = scmp.lt.u32.totalorder %s3249_s28, %s3502_s4 }
 0x105   :  { %p3255_p0 = pnand %p3253_p13, %p3250_p12 }
 0x107   :  { %3258 = shalt.err (!%p3255_p0)
}
 0x108   :  { %s3259_s24 = scalar_lea.vmem %s207_s8, 4096  ;;  %p3264_p2 = scmp.lt.s32.totalorder %s207_s8, %s207_s8 }
 0x109   :  { %p3260_p1 = scmp.ne.s32.totalorder %s207_s8, %s3259_s24  ;;  %p3265_p3 = scmp.lt.s32.totalorder %s3259_s24, %s3259_s24 }
 0x10b   :  { %p3266_p4 = por %p3265_p3, %p3264_p2 }
 0x10d   :  { %p3267_p5 = pnand %p3266_p4, %p3260_p1 }
 0x10f   :  { %3270 = shalt.err (!%p3267_p5)
}
 0x110   :  { %212 = dma.hbm_to_vmem [thread:$0]  %s3502_s4, 4096, %s207_s8, [#allocation18], %s3396_s23, %s3396_s23, %s3397_s3  }
 0x111   :  { %s3271_s20 = scalar_lea.hbm %s3522_s9, 512 }
 0x112   :  { %p3272_p6 = scmp.ne.s32.totalorder %s3522_s9, %s3271_s20  ;;  %p3275_p7 = scmp.lt.u32.totalorder %s3271_s20, %s3522_s9 }
 0x114   :  { %p3277_p8 = pnand %p3275_p7, %p3272_p6 }
 0x116   :  { %3280 = shalt.err (!%p3277_p8)
}
 0x117   :  { %s3281_s0 = scalar_lea.vmem %s3656_s26, 512  ;;  %p3286_p10 = scmp.lt.s32.totalorder %s3656_s26, %s3656_s26 }
 0x118   :  { %p3282_p9 = scmp.ne.s32.totalorder %s3656_s26, %s3281_s0  ;;  %p3287_p11 = scmp.lt.s32.totalorder %s3281_s0, %s3281_s0 }
 0x11a   :  { %p3288_p12 = por %p3287_p11, %p3286_p10 }
 0x11c   :  { %p3289_p13 = pnand %p3288_p12, %p3282_p9 }
 0x11e   :  { %3292 = shalt.err (!%p3289_p13)
}
 0x11f   :  { %s3902_s4 = sld [smem:[#allocation48_spill]]  ;;  %s3404_s23 = smov [#allocation25]  }
 0x120   :  { %238 = dma.hbm_to_vmem [thread:$0]  %s3522_s9, 512, %s3656_s26, [#allocation21], %s3388_s7, %s3388_s7, %s3389_s21  }
 0x121   :  { %s260_s3 = sshll.u32 %s3404_s23, 4  ;;  %s3405_s5 = smov [#allocation26]   ;;  %s261_s3 = int_to_ptr.vmem [resolvable:$true] %s260_s3 }
 0x122   :  { %s273_s1 = sshll.u32 %s3405_s5, 4  ;;  %s274_s1 = int_to_ptr.vmem [resolvable:$true] %s273_s1 }
 0x125   :  { %s3293_s17 = scalar_lea.hbm %s3902_s4, 1024 }
 0x126   :  { %p3294_p0 = scmp.ne.s32.totalorder %s3902_s4, %s3293_s17  ;;  %p3297_p1 = scmp.lt.u32.totalorder %s3293_s17, %s3902_s4 }
 0x128   :  { %p3299_p2 = pnand %p3297_p1, %p3294_p0 }
 0x12a   :  { %3302 = shalt.err (!%p3299_p2)
}
 0x12b   :  { %s3303_s2 = scalar_lea.vmem %s261_s3, 1024  ;;  %p3308_p4 = scmp.lt.s32.totalorder %s261_s3, %s261_s3 }
 0x12c   :  { %p3304_p3 = scmp.ne.s32.totalorder %s261_s3, %s3303_s2  ;;  %p3309_p5 = scmp.lt.s32.totalorder %s3303_s2, %s3303_s2 }
 0x12e   :  { %p3310_p6 = por %p3309_p5, %p3308_p4 }
 0x130   :  { %p3311_p7 = pnand %p3310_p6, %p3304_p3 }
 0x132   :  { %3314 = shalt.err (!%p3311_p7)
}
 0x133   :  { %s3903_s9 = sld [smem:[#allocation49_spill]] }
 0x134   :  { %266 = dma.hbm_to_vmem [thread:$0]  %s3902_s4, 1024, %s261_s3, [#allocation24], %s3388_s7, %s3388_s7, %s3389_s21  }
 0x139   :  { %s3315_s12 = scalar_lea.hbm %s3903_s9, 16 }
 0x13a   :  { %p3316_p8 = scmp.ne.s32.totalorder %s3903_s9, %s3315_s12  ;;  %p3319_p9 = scmp.lt.u32.totalorder %s3315_s12, %s3903_s9 }
 0x13c   :  { %p3321_p10 = pnand %p3319_p9, %p3316_p8 }
 0x13e   :  { %3324 = shalt.err (!%p3321_p10)
}
 0x13f   :  { %s3325_s10 = scalar_lea.vmem %s274_s1, 16  ;;  %s3329_s29 = scalar_lea.vmem %s274_s1, 32 }
 0x140   :  { %p3326_p11 = scmp.ne.s32.totalorder %s274_s1, %s3325_s10  ;;  %p3330_p12 = scmp.lt.s32.totalorder %s274_s1, %s274_s1 }
 0x141   :  { %p3331_p13 = scmp.lt.s32.totalorder %s3329_s29, %s3325_s10 }
 0x143   :  { %p3332_p0 = por %p3331_p13, %p3330_p12 }
 0x145   :  { %p3333_p1 = pnand %p3332_p0, %p3326_p11 }
 0x147   :  { %3336 = shalt.err (!%p3333_p1)
}
 0x148   :  { %276 = dma.hbm_to_vmem [thread:$0]  %s3903_s9, 16, %s274_s1, [#allocation27]  }
 0x149   :  { %3337 = dma.done.wait [#allocation4], 512  }
 0x14a   :  { %3338 = vsyncadd [#allocation4], 4294966784 }
 0x14b   :  { %3339 = dma.done.wait [#allocation6], 64  }
 0x14c   :  { %3340 = vsyncadd [#allocation6], 4294967232 }
 0x14d   :  { %3341 = dma.done.wait [#allocation9], 144  }
 0x14e   :  { %3342 = vsyncadd [#allocation9], 4294967152 }
 0x14f   :  { %3343 = dma.done.wait [#allocation12], 1040  }
 0x150   :  { %3344 = vsyncadd [#allocation12], 4294966256 }
 0x151   :  { %3345 = dma.done.wait [#allocation15], 784  }
 0x152   :  { %3346 = vsyncadd [#allocation15], 4294966512 }
 0x153   :  { %3347 = dma.done.wait [#allocation18], 4128  }
 0x154   :  { %3348 = vsyncadd [#allocation18], 4294963168 }
 0x155   :  { %3349 = dma.done.wait [#allocation21], 544  }
 0x156   :  { %3350 = vsyncadd [#allocation21], 4294966752 }
 0x157   :  { %3351 = dma.done.wait [#allocation24], 1536  }
 0x158   :  { %3352 = vsyncadd [#allocation24], 4294965760 }
 0x159   :  { %3353 = dma.done.wait [#allocation27], 16  }
 0x15a   :  { %3354 = vsyncadd [#allocation27], 4294967280  ;;  %s3904_s7 = sld [smem:[#allocation37_spill]]  ;;  %s3905_s21 = sld [smem:[#allocation40_spill]]  ;;  %v3406_v1 = vmov 0   ;;  %vm372_vm0 = vcmask 261120   ;;  %v342_v52 = vlaneseq }
 0x15b   :  { %408 = vmatprep.mubr.bf16.mxu1 %v3406_v1  ;;  %v2789_v2 = vld [vmem:[#allocation3 + $0x4] ss:$8 sps:$4 sm:$0xff]   ;;  %v2791_v3 = vld [vmem:[#allocation3] ss:$8 sps:$4 sm:$0xff]   ;;  %v2792_v4 = vld [vmem:[#allocation3 + $0x14] ss:$8 sps:$4 sm:$0xff]  }
 0x15c   :  { %376 = vmatprep.subr.bf16.mxu1 %v2789_v2  ;;  %v2794_v5 = vld [vmem:[#allocation3 + $0x10] ss:$8 sps:$4 sm:$0xff]   ;;  %s3906_s11 = sld [smem:[#allocation41_spill]]  ;;  %v343_v53 = vshrl.u32 %v342_v52, 7  ;;  %v340_v55 = vld [vmem:[#allocation5] sm:$0x3] }
 0x15d   :  { %377 = vmatpush1.bf16.msra.mxu1 %v2791_v3  ;;  %vm3408_vm3 = vmmov 0   ;;  %s3907_s16 = sld [smem:[#allocation38_spill]]  ;;  %vm873_vm6 = vcmask 130048   ;;  %s3908_s27 = sld [smem:[#allocation43_spill]]  ;;  %vm1200_vm8 = vcmask 392192   ;;  %vm1726_vm15 = vcmask 523264  }
 0x15e   :  { %378 = vmatprep.subr.bf16.mxu1 %v2792_v4  ;;  %v3734_v54 = vsub.s32 0, %v343_v53  ;;  %v3736_v56 = vsub.s32 1, %v343_v53  ;;  %s3909_s15 = sld [smem:[#allocation39_spill]]  ;;  %s3910_s18 = sld [smem:[#allocation44_spill]] }
 0x15f   :  { %s3911_s19 = sld [smem:[#allocation46_spill]]  ;;  %s3912_s22 = sld [smem:[#allocation42_spill]] }
 0x160   :  { %v334_v6 = vld [vmem:[%s3904_s7] sm:$0xff]  ;;  %v2800_v10 = vld [vmem:[%s3905_s21 + $0x14] ss:$8 sps:$4 sm:$0xff]   ;;  %v2798_v11 = vld [vmem:[%s3905_s21 + $0x10] ss:$8 sps:$4 sm:$0xff]   ;;  %v345_v57 = vrot.slane %v340_v55, %v3734_v54  ;;  %v349_v58 = vrot.slane %v340_v55, %v3736_v56  ;;  %s3913_s30 = sld [smem:[#allocation45_spill]] }
 0x161   :  { %v2797_v7 = vld [vmem:[%s3905_s21 + $0x4] ss:$8 sps:$4 sm:$0xff]   ;;  %v335_v8 = vpack.c.bf16 %v334_v6, %v334_v6  ;;  %379 = vmatpush1.bf16.msra.mxu1 %v2794_v5  ;;  %v2795_v9 = vld [vmem:[%s3905_s21] ss:$8 sps:$4 sm:$0xff]   ;;  %v2806_v14 = vld [vmem:[%s3905_s21 + $0x34] ss:$8 sps:$4 sm:$0xff]  }
 0x162   :  { %629 = vmatprep.subr.bf16.mxu1 %v2797_v7  ;;  %v2803_v12 = vld [vmem:[%s3905_s21 + $0x24] ss:$8 sps:$4 sm:$0xff]   ;;  %v2801_v13 = vld [vmem:[%s3905_s21 + $0x20] ss:$8 sps:$4 sm:$0xff]   ;;  %v2804_v15 = vld [vmem:[%s3905_s21 + $0x30] ss:$8 sps:$4 sm:$0xff]  }
 0x163   :  { %v2809_v16 = vld [vmem:[%s3905_s21 + $0x44] ss:$8 sps:$4 sm:$0xff]   ;;  %v2807_v17 = vld [vmem:[%s3905_s21 + $0x40] ss:$8 sps:$4 sm:$0xff]   ;;  %v2812_v18 = vld [vmem:[%s3905_s21 + $0x54] ss:$8 sps:$4 sm:$0xff]  }
 0x164   :  { %2317 = vmatmul.mubr.msk.bf16.vlgmr.msra.gmra.mrb[0].mxu1 %vm372_vm0, %v335_v8  ;;  %v2810_v19 = vld [vmem:[%s3905_s21 + $0x50] ss:$8 sps:$4 sm:$0xff]   ;;  %v2815_v20 = vld [vmem:[%s3905_s21 + $0x64] ss:$8 sps:$4 sm:$0xff]   ;;  %v2813_v21 = vld [vmem:[%s3905_s21 + $0x60] ss:$8 sps:$4 sm:$0xff]  }
 0x165   :  { %630 = vmatpush1.bf16.msra.mxu1 %v2795_v9  ;;  %v2818_v22 = vld [vmem:[%s3905_s21 + $0x74] ss:$8 sps:$4 sm:$0xff]   ;;  %v2816_v23 = vld [vmem:[%s3905_s21 + $0x70] ss:$8 sps:$4 sm:$0xff]   ;;  %v2821_v24 = vld [vmem:[%s3905_s21 + $0x84] ss:$8 sps:$4 sm:$0xff]  }
 0x166   :  { %631 = vmatprep.subr.bf16.mxu1 %v2800_v10  ;;  %v2819_v25 = vld [vmem:[%s3905_s21 + $0x80] ss:$8 sps:$4 sm:$0xff]   ;;  %v2824_v26 = vld [vmem:[%s3905_s21 + $0x94] ss:$8 sps:$4 sm:$0xff]   ;;  %v2822_v27 = vld [vmem:[%s3905_s21 + $0x90] ss:$8 sps:$4 sm:$0xff]  }
 0x167   :  { %v2827_v28 = vld [vmem:[%s3905_s21 + $0xa4] ss:$8 sps:$4 sm:$0xff]   ;;  %v2825_v29 = vld [vmem:[%s3905_s21 + $0xa0] ss:$8 sps:$4 sm:$0xff]   ;;  %v2830_v30 = vld [vmem:[%s3905_s21 + $0xb4] ss:$8 sps:$4 sm:$0xff]  }
 0x168   :  { %v2828_v31 = vld [vmem:[%s3905_s21 + $0xb0] ss:$8 sps:$4 sm:$0xff]   ;;  %v2833_v32 = vld [vmem:[%s3905_s21 + $0xc4] ss:$8 sps:$4 sm:$0xff]   ;;  %v2831_v33 = vld [vmem:[%s3905_s21 + $0xc0] ss:$8 sps:$4 sm:$0xff]  }
 0x169   :  { %632 = vmatpush1.bf16.msra.mxu1 %v2798_v11  ;;  %v2836_v34 = vld [vmem:[%s3905_s21 + $0xd4] ss:$8 sps:$4 sm:$0xff]   ;;  %v2834_v35 = vld [vmem:[%s3905_s21 + $0xd0] ss:$8 sps:$4 sm:$0xff]   ;;  %v2839_v36 = vld [vmem:[%s3905_s21 + $0xe4] ss:$8 sps:$4 sm:$0xff]  }
 0x16a   :  { %633 = vmatprep.subr.bf16.mxu1 %v2803_v12  ;;  %v2837_v37 = vld [vmem:[%s3905_s21 + $0xe0] ss:$8 sps:$4 sm:$0xff]   ;;  %v2842_v38 = vld [vmem:[%s3905_s21 + $0xf4] ss:$8 sps:$4 sm:$0xff]   ;;  %v2840_v39 = vld [vmem:[%s3905_s21 + $0xf0] ss:$8 sps:$4 sm:$0xff]  }
 0x16b   :  { %v2843_v40 = vld [vmem:[%s3906_s11 + $0x40] sm:$0xff]   ;;  %v2845_v42 = vld [vmem:[%s3906_s11 + $0x48] sm:$0xff]   ;;  %v2847_v44 = vld [vmem:[%s3906_s11 + $0x50] sm:$0xff]   ;;  %v3407_v12 = vmov 0.0   ;;  %s3914_s8 = sld [smem:[#allocation50_spill]]  ;;  %s3915_s14 = sld [smem:[#allocation47_spill]] }
 0x16c   :  { %v2844_v41 = vld [vmem:[%s3906_s11] sm:$0xff]   ;;  %2487 = vmatprep.subr.bf16.mxu0 %v2843_v40  ;;  %v2846_v43 = vld [vmem:[%s3906_s11 + $0x8] sm:$0xff]   ;;  %v2848_v45 = vld [vmem:[%s3906_s11 + $0x10] sm:$0xff]  }
 0x16d   :  { %634 = vmatpush1.bf16.msra.mxu1 %v2801_v13  ;;  %2488 = vmatpush3.bf16.msra.mxu0 %v2844_v41  ;;  %v2849_v46 = vld [vmem:[%s3906_s11 + $0x58] sm:$0xff]   ;;  %v2851_v48 = vld [vmem:[%s3906_s11 + $0x60] sm:$0xff]   ;;  %v2853_v50 = vld [vmem:[%s3906_s11 + $0x68] sm:$0xff]  }
 0x16e   :  { %635 = vmatprep.subr.bf16.mxu1 %v2806_v14  ;;  %2489 = vmatprep.subr.bf16.mxu0 %v2845_v42  ;;  %v2850_v47 = vld [vmem:[%s3906_s11 + $0x18] sm:$0xff]   ;;  %v2852_v49 = vld [vmem:[%s3906_s11 + $0x20] sm:$0xff]   ;;  %v2854_v51 = vld [vmem:[%s3906_s11 + $0x28] sm:$0xff]  }
 0x16f   :  { %v2855_v8 = vld [vmem:[%s3906_s11 + $0x70] sm:$0xff]   ;;  %v2857_v10 = vld [vmem:[%s3906_s11 + $0x78] sm:$0xff]   ;;  %v457_v13 = vld [vmem:[#allocation7] sm:$0x3] }
 0x170   :  { %v2856_v9 = vld [vmem:[%s3906_s11 + $0x30] sm:$0xff]   ;;  %v2858_v11 = vld [vmem:[%s3906_s11 + $0x38] sm:$0xff]   ;;  %v462_v14 = vrot.slane %v457_v13, %v3734_v54  ;;  %v2892_v40 = vld [vmem:[%s3908_s27] sm:$0xff]  }
 0x171   :  { %636 = vmatpush1.bf16.msra.mxu1 %v2804_v15  ;;  %2490 = vmatpush3.bf16.msra.mxu0 %v2846_v43  ;;  %v466_v15 = vrot.slane %v457_v13, %v3736_v56  ;;  %v2896_v41 = vld [vmem:[%s3908_s27 + $0x8] sm:$0xff]   ;;  %v2900_v42 = vld [vmem:[%s3908_s27 + $0x10] sm:$0xff]   ;;  %v2904_v43 = vld [vmem:[%s3908_s27 + $0x18] sm:$0xff]  }
 0x172   :  { %637 = vmatprep.subr.bf16.mxu1 %v2809_v16  ;;  %2491 = vmatprep.subr.bf16.mxu0 %v2847_v44  ;;  %v2908_v44 = vld [vmem:[%s3908_s27 + $0x20] sm:$0xff]  }
 0x173   :  { %v2886_v13 = vld [vmem:[#allocation19 + $0x30] ss:$8 sps:$4 sm:$0xff]  }
 0x175   :  { %638 = vmatpush1.bf16.msra.mxu1 %v2807_v17  ;;  %2492 = vmatpush3.bf16.msra.mxu0 %v2848_v45  ;;  %v2912_v45 = vld [vmem:[%s3908_s27 + $0x28] sm:$0xff]  }
 0x176   :  { %639 = vmatprep.subr.bf16.mxu1 %v2812_v18  ;;  %2493 = vmatprep.subr.bf16.mxu0 %v2849_v46 }
 0x179   :  { %640 = vmatpush1.bf16.msra.mxu1 %v2810_v19  ;;  %2494 = vmatpush3.bf16.msra.mxu0 %v2850_v47 }
 0x17a   :  { %641 = vmatprep.subr.bf16.mxu1 %v2815_v20  ;;  %2495 = vmatprep.subr.bf16.mxu0 %v2851_v48 }
 0x17d   :  { %642 = vmatpush1.bf16.msra.mxu1 %v2813_v21  ;;  %2496 = vmatpush3.bf16.msra.mxu0 %v2852_v49 }
 0x17e   :  { %643 = vmatprep.subr.bf16.mxu1 %v2818_v22  ;;  %2497 = vmatprep.subr.bf16.mxu0 %v2853_v50 }
 0x181   :  { %644 = vmatpush1.bf16.msra.mxu1 %v2816_v23  ;;  %2498 = vmatpush3.bf16.msra.mxu0 %v2854_v51  ;;  %v2367_v51 = vld [vmem:[#allocation10] ss:$0 sm:$0xff] }
 0x182   :  { %645 = vmatprep.subr.bf16.mxu1 %v2821_v24  ;;  %2499 = vmatprep.subr.bf16.mxu0 %v2855_v8  ;;  %v2882_v8 = vld [vmem:[#allocation19 + $0x14] ss:$8 sps:$4 sm:$0xff]  }
 0x185   :  { %646 = vmatpush1.bf16.msra.mxu1 %v2819_v25  ;;  %2500 = vmatpush3.bf16.msra.mxu0 %v2856_v9  ;;  %v2880_v9 = vld [vmem:[#allocation19 + $0x10] ss:$8 sps:$4 sm:$0xff]  }
 0x186   :  { %647 = vmatprep.subr.bf16.mxu1 %v2824_v26  ;;  %2501 = vmatprep.subr.bf16.mxu0 %v2857_v10  ;;  %v2885_v10 = vld [vmem:[#allocation19 + $0x24] ss:$8 sps:$4 sm:$0xff]  }
 0x189   :  { %648 = vmatpush1.bf16.msra.mxu1 %v2822_v27  ;;  %2502 = vmatpush3.bf16.msra.mxu0 %v2858_v11  ;;  %v2859_v27 = vld [vmem:[#allocation8] sm:$0xff]   ;;  %v2888_v11 = vld [vmem:[#allocation19 + $0x34] ss:$8 sps:$4 sm:$0xff]  }
 0x18a   :  { %649 = vmatprep.subr.bf16.mxu1 %v2827_v28  ;;  %2593 = vmatprep.subr.bf16.mxu0 %v3407_v12 }
 0x18d   :  { %650 = vmatpush1.bf16.msra.mxu1 %v2825_v29  ;;  %v856_v29 = vld [vmem:[%s3907_s16] sm:$0xff] }
 0x18e   :  { %651 = vmatprep.subr.bf16.mxu1 %v2830_v30  ;;  %v857_v30 = vpack.c.bf16 %v856_v29, %v856_v29  ;;  %v2919_v29 = vld [vmem:[#allocation19 + $0xb4] ss:$8 sps:$4 sm:$0xff]  }
 0x191   :  { %652 = vmatpush1.bf16.msra.mxu1 %v2828_v31  ;;  %v2860_v31 = vld [vmem:[#allocation11] sm:$0xff]  }
 0x192   :  { %653 = vmatprep.subr.bf16.mxu1 %v2833_v32  ;;  %v2861_v32 = vld [vmem:[#allocation11 + $0x8] sm:$0xff]  }
 0x195   :  { %654 = vmatpush1.bf16.msra.mxu1 %v2831_v33  ;;  %v2862_v33 = vld [vmem:[#allocation11 + $0x10] sm:$0xff]  }
 0x196   :  { %655 = vmatprep.subr.bf16.mxu1 %v2836_v34  ;;  %v2863_v34 = vld [vmem:[#allocation11 + $0x18] sm:$0xff]  }
 0x199   :  { %656 = vmatpush1.bf16.msra.mxu1 %v2834_v35  ;;  %v2864_v35 = vld [vmem:[#allocation11 + $0x20] sm:$0xff]  }
 0x19a   :  { %657 = vmatprep.subr.bf16.mxu1 %v2839_v36  ;;  %v2865_v36 = vld [vmem:[#allocation11 + $0x28] sm:$0xff]  }
 0x19d   :  { %658 = vmatpush1.bf16.msra.mxu1 %v2837_v37  ;;  %v2866_v37 = vld [vmem:[#allocation11 + $0x30] sm:$0xff]  }
 0x19e   :  { %659 = vmatprep.subr.bf16.mxu1 %v2842_v38  ;;  %v2867_v38 = vld [vmem:[#allocation11 + $0x38] sm:$0xff]  }
 0x1a1   :  { %660 = vmatpush1.bf16.msra.mxu1 %v2840_v39  ;;  %v2870_v39 = vld [vmem:[#allocation16 + $0x4] ss:$8 sps:$4 sm:$0xff]  }
 0x1a2   :  { %2619 = vmatprep.subr.bf16.mxu1 %v3407_v12 }
 0x237   :  { %v410_v59 = vpop.f32.mrb[0].mxu1 }
 0x238   :  { %v411_v60 = vadd.f32 %v410_v59, %v345_v57  ;;  %v412_v61 = vpop.f32.mrb[1].mxu1 }
 0x239   :  { %v413_v62 = vadd.f32 %v412_v61, %v349_v58  ;;  %v414_v63 = vpop.f32.mrb[2].mxu1  ;;  %v2868_v61 = vld [vmem:[#allocation16] ss:$8 sps:$4 sm:$0xff]  }
 0x23a   :  { %vm417_vm1 = vcmp.ge.f32.partialorder %v411_v60, 0.0  ;;  %v419_v0 = vmul.f32 0.25, %v411_v60  ;;  %v415_v2 = vpop.f32.mrb[3].mxu1  ;;  %v2873_v63 = vld [vmem:[#allocation16 + $0x14] ss:$8 sps:$4 sm:$0xff]  }
 0x23b   :  { %vm418_vm2 = vcmp.ge.f32.partialorder %v413_v62, 0.0  ;;  %v420_v3 = vmul.f32 0.25, %v413_v62  ;;  %v2876_v2 = vld [vmem:[#allocation16 + $0x24] ss:$8 sps:$4 sm:$0xff]  }
 0x23c   :  { %v421_v4 = vsel %vm417_vm1, %v411_v60, %v419_v0  ;;  %v2871_v0 = vld [vmem:[#allocation16 + $0x10] ss:$8 sps:$4 sm:$0xff]  }
 0x23d   :  { %v422_v5 = vsel %vm418_vm2, %v413_v62, %v420_v3  ;;  %v423_v7 = vpack.c.bf16 %v421_v4, %v421_v4  ;;  %v2874_v3 = vld [vmem:[#allocation16 + $0x20] ss:$8 sps:$4 sm:$0xff]   ;;  %v1150_v4 = vld [vmem:[%s3909_s15] sm:$0xff] }
 0x23e   :  { %v424_v6 = vpack.c.bf16 %v422_v5, %v422_v5  ;;  %v2879_v5 = vld [vmem:[#allocation19 + $0x4] ss:$8 sps:$4 sm:$0xff]  }
 0x240   :  { %661 = vmatprep.mubr.bf16.mxu1 %v424_v6  ;;  %v1151_v6 = vpack.c.bf16 %v1150_v4, %v1150_v4 }
 0x241   :  { %662 = vmatmul.mubr.bf16.vlgmr.msra.gmra.mrb[4].mxu1 %v423_v7  ;;  %v2877_v7 = vld [vmem:[#allocation19] ss:$8 sps:$4 sm:$0xff]  }
 0x242   :  { %2635 = vmatprep.mubr.msk.bf16.mxu1 %vm3408_vm3, %v3407_v12  ;;  %2620 = vmatpush3.bf16.msra.mxu1 %v2892_v40  ;;  %v2933_v40 = vld [vmem:[%s3910_s18 + $0x40] sm:$0xff]  }
 0x243   :  { %2621 = vmatprep.subr.bf16.mxu1 %v3407_v12 }
 0x246   :  { %2622 = vmatpush3.bf16.msra.mxu1 %v2896_v41  ;;  %v2370_v41 = vld [vmem:[#allocation13] ss:$0 sm:$0xff] }
 0x247   :  { %2623 = vmatprep.subr.bf16.mxu1 %v3407_v12 }
 0x24a   :  { %2624 = vmatpush3.bf16.msra.mxu1 %v2900_v42 }
 0x24b   :  { %2625 = vmatprep.subr.bf16.mxu1 %v3407_v12 }
 0x24e   :  { %2626 = vmatpush3.bf16.msra.mxu1 %v2904_v43 }
 0x24f   :  { %2627 = vmatprep.subr.bf16.mxu1 %v3407_v12 }
 0x252   :  { %2628 = vmatpush3.bf16.msra.mxu1 %v2908_v44 }
 0x253   :  { %2629 = vmatprep.subr.bf16.mxu1 %v3407_v12 }
 0x256   :  { %2630 = vmatpush3.bf16.msra.mxu1 %v2912_v45 }
 0x257   :  { %2631 = vmatprep.subr.bf16.mxu1 %v3407_v12 }
 0x314   :  { %v663_v16 = vpop.f32.mrb[4].mxu1 }
 0x315   :  { %v664_v17 = vadd.f32 %v663_v16, %v462_v14  ;;  %v665_v18 = vpop.f32.mrb[5].mxu1  ;;  %v2891_v14 = vld [vmem:[#allocation19 + $0x44] ss:$8 sps:$4 sm:$0xff]   ;;  %v2895_v16 = vld [vmem:[#allocation19 + $0x54] ss:$8 sps:$4 sm:$0xff]  }
 0x316   :  { %v666_v19 = vadd.f32 %v665_v18, %v466_v15  ;;  %v667_v20 = vpop.f32.mrb[6].mxu1  ;;  %v2889_v15 = vld [vmem:[#allocation19 + $0x40] ss:$8 sps:$4 sm:$0xff]   ;;  %v2899_v18 = vld [vmem:[#allocation19 + $0x64] ss:$8 sps:$4 sm:$0xff]  }
 0x317   :  { %vm670_vm4 = vcmp.ge.f32.partialorder %v664_v17, 0.0  ;;  %v672_v21 = vmul.f32 0.25, %v664_v17  ;;  %v668_v22 = vpop.f32.mrb[7].mxu1  ;;  %v2903_v20 = vld [vmem:[#allocation19 + $0x74] ss:$8 sps:$4 sm:$0xff]  }
 0x318   :  { %vm671_vm5 = vcmp.ge.f32.partialorder %v666_v19, 0.0  ;;  %v673_v23 = vmul.f32 0.25, %v666_v19  ;;  %v2907_v22 = vld [vmem:[#allocation19 + $0x84] ss:$8 sps:$4 sm:$0xff]  }
 0x319   :  { %v674_v24 = vsel %vm670_vm4, %v664_v17, %v672_v21  ;;  %v2893_v17 = vld [vmem:[#allocation19 + $0x50] ss:$8 sps:$4 sm:$0xff]  }
 0x31a   :  { %v675_v25 = vsel %vm671_vm5, %v666_v19, %v673_v23  ;;  %v676_v28 = vpack.c.bf16 %v674_v24, %v674_v24  ;;  %v2897_v19 = vld [vmem:[#allocation19 + $0x60] ss:$8 sps:$4 sm:$0xff]   ;;  %v2901_v21 = vld [vmem:[#allocation19 + $0x70] ss:$8 sps:$4 sm:$0xff]   ;;  %v2911_v24 = vld [vmem:[#allocation19 + $0x94] ss:$8 sps:$4 sm:$0xff]  }
 0x31b   :  { %v677_v26 = vpack.c.bf16 %v675_v25, %v675_v25  ;;  %v2905_v23 = vld [vmem:[#allocation19 + $0x80] ss:$8 sps:$4 sm:$0xff]   ;;  %v2909_v25 = vld [vmem:[#allocation19 + $0x90] ss:$8 sps:$4 sm:$0xff]   ;;  %vm2267_vm5 = vcmask 7168  }
 0x31d   :  { %845 = vmatprep.mubr.bf16.mxu0 %v677_v26  ;;  %v2915_v26 = vld [vmem:[#allocation19 + $0xa4] ss:$8 sps:$4 sm:$0xff]  }
 0x31e   :  { %846 = vmatmul.mubr.bf16.vlgmr.msra.gmra.mrb[0].mxu0 %v676_v28  ;;  %v2916_v28 = vld [vmem:[%s3908_s27 + $0x30] sm:$0xff]  }
 0x31f   :  { %2594 = vmatpush3.bf16.msra.mxu0 %v2859_v27  ;;  %2595 = vmatprep.mubr.msk.bf16.mxu0 %vm3408_vm3, %v3407_v12  ;;  %v2913_v27 = vld [vmem:[#allocation19 + $0xa0] ss:$8 sps:$4 sm:$0xff]  }
 0x320   :  { %2599 = vmatprep.subr.bf16.mxu0 %v3407_v12  ;;  %2632 = vmatpush3.bf16.msra.mxu1 %v2916_v28 }
 0x321   :  { %2633 = vmatprep.subr.bf16.mxu1 %v3407_v12 }
 0x326   :  { %2596 = vmatmul.mubr.msk.bf16.vlgmr.msra.gmra.mrb[4].mxu0 %vm873_vm6, %v857_v30  ;;  %v2917_v30 = vld [vmem:[#allocation19 + $0xb0] ss:$8 sps:$4 sm:$0xff]  }
 0x327   :  { %2600 = vmatpush3.bf16.msra.mxu0 %v2860_v31  ;;  %2615 = vmatprep.mubr.msk.bf16.mxu0 %vm3408_vm3, %v3407_v12  ;;  %v2920_v31 = vld [vmem:[%s3908_s27 + $0x38] sm:$0xff]  }
 0x328   :  { %2601 = vmatprep.subr.bf16.mxu0 %v3407_v12  ;;  %2634 = vmatpush3.bf16.msra.mxu1 %v2920_v31 }
 0x329   :  { %2529 = vmatprep.subr.bf16.mxu1 %v2933_v40 }
 0x32b   :  { %2602 = vmatpush3.bf16.msra.mxu0 %v2861_v32  ;;  %v2923_v32 = vld [vmem:[#allocation19 + $0xc4] ss:$8 sps:$4 sm:$0xff]  }
 0x32c   :  { %2603 = vmatprep.subr.bf16.mxu0 %v3407_v12 }
 0x32f   :  { %2604 = vmatpush3.bf16.msra.mxu0 %v2862_v33  ;;  %v2921_v33 = vld [vmem:[#allocation19 + $0xc0] ss:$8 sps:$4 sm:$0xff]  }
 0x330   :  { %2605 = vmatprep.subr.bf16.mxu0 %v3407_v12 }
 0x333   :  { %2606 = vmatpush3.bf16.msra.mxu0 %v2863_v34  ;;  %v2924_v34 = vld [vmem:[#allocation19 + $0xd0] ss:$8 sps:$4 sm:$0xff]  }
 0x334   :  { %2607 = vmatprep.subr.bf16.mxu0 %v3407_v12 }
 0x337   :  { %2608 = vmatpush3.bf16.msra.mxu0 %v2864_v35  ;;  %v2926_v35 = vld [vmem:[#allocation19 + $0xd4] ss:$8 sps:$4 sm:$0xff]  }
 0x338   :  { %2609 = vmatprep.subr.bf16.mxu0 %v3407_v12 }
 0x33b   :  { %2610 = vmatpush3.bf16.msra.mxu0 %v2865_v36  ;;  %v2929_v36 = vld [vmem:[#allocation19 + $0xe4] ss:$8 sps:$4 sm:$0xff]  }
 0x33c   :  { %2611 = vmatprep.subr.bf16.mxu0 %v3407_v12 }
 0x33f   :  { %2612 = vmatpush3.bf16.msra.mxu0 %v2866_v37  ;;  %v2927_v37 = vld [vmem:[#allocation19 + $0xe0] ss:$8 sps:$4 sm:$0xff]  }
 0x340   :  { %2613 = vmatprep.subr.bf16.mxu0 %v3407_v12 }
 0x343   :  { %2614 = vmatpush3.bf16.msra.mxu0 %v2867_v38  ;;  %v2932_v38 = vld [vmem:[#allocation19 + $0xf4] ss:$8 sps:$4 sm:$0xff]  }
 0x344   :  { %1204 = vmatprep.subr.bf16.mxu0 %v2870_v39  ;;  %v2930_v39 = vld [vmem:[#allocation19 + $0xf0] ss:$8 sps:$4 sm:$0xff]  }
 0x3f1   :  { %v2503_v46 = vpop.f32.mrb[0].mxu0 }
 0x3f2   :  { %v2504_v47 = vpop.f32.mrb[1].mxu0 }
 0x3f3   :  { %v3775_v48 = vadd.f32 %v2504_v47, %v2503_v46  ;;  %v2506_v49 = vpop.f32.mrb[2].mxu0 }
 0x3f4   :  { %v2507_v50 = vpop.f32.mrb[3].mxu0 }
 0x3f5   :  { %v2934_v50 = vld [vmem:[%s3910_s18] sm:$0xff]  }
 0x3f9   :  { %v911_v52 = vpop.f32.mrb[4].mxu0 }
 0x3fa   :  { %v912_v53 = vadd.f32 %v2367_v51, %v911_v52  ;;  %v2597_v55 = vpop.f32.mrb[5].mxu0  ;;  %v1158_v52 = vld [vmem:[#allocation17] sm:$0x3] }
 0x3fb   :  { %v914_v57 = vpop.f32.mrb[6].mxu0  ;;  %v1163_v55 = vrot.slane %v1158_v52, %v3734_v54 }
 0x3fc   :  { %vm917_vm7 = vcmp.ge.f32.partialorder %v912_v53, 0.0  ;;  %v918_v58 = vmul.f32 0.25, %v912_v53  ;;  %v2598_v59 = vpop.f32.mrb[7].mxu0  ;;  %v2936_v57 = vld [vmem:[%s3910_s18 + $0x8] sm:$0xff]  }
 0x3fd   :  { %v2937_v59 = vld [vmem:[%s3910_s18 + $0x50] sm:$0xff]  }
 0x3fe   :  { %v919_v60 = vsel %vm917_vm7, %v912_v53, %v918_v58  ;;  %v2935_v53 = vld [vmem:[%s3910_s18 + $0x48] sm:$0xff]   ;;  %v1167_v58 = vrot.slane %v1158_v52, %v3736_v56 }
 0x3ff   :  { %v920_v62 = vpack.c.bf16 %v919_v60, %v919_v60 }
 0x401   :  { %2616 = vmatmul.mubr.bf16.vlgmr.msra.gmra.mrb[8].mxu0 %v920_v62 }
 0x402   :  { %1205 = vmatpush1.bf16.msra.mxu0 %v2868_v61  ;;  %1236 = vmatprep.mubr.bf16.mxu0 %v3406_v1  ;;  %v2883_v1 = vld [vmem:[#allocation19 + $0x20] ss:$8 sps:$4 sm:$0xff]  }
 0x403   :  { %1206 = vmatprep.subr.bf16.mxu0 %v2873_v63  ;;  %v2938_v63 = vld [vmem:[%s3910_s18 + $0x10] sm:$0xff]  }
 0x406   :  { %1207 = vmatpush1.bf16.msra.mxu0 %v2871_v0 }
 0x407   :  { %1208 = vmatprep.subr.bf16.mxu0 %v2876_v2 }
 0x40a   :  { %1209 = vmatpush1.bf16.msra.mxu0 %v2874_v3 }
 0x40b   :  { %1457 = vmatprep.subr.bf16.mxu0 %v2879_v5 }
 0x40d   :  { %2394 = vmatmul.mubr.msk.bf16.vlgmr.msra.gmra.mrb[12].mxu0 %vm1200_vm8, %v1151_v6 }
 0x40e   :  { %1458 = vmatpush1.bf16.msra.mxu0 %v2877_v7 }
 0x40f   :  { %1459 = vmatprep.subr.bf16.mxu0 %v2882_v8 }
 0x412   :  { %1460 = vmatpush1.bf16.msra.mxu0 %v2880_v9 }
 0x413   :  { %1461 = vmatprep.subr.bf16.mxu0 %v2885_v10  ;;  %v2939_v10 = vld [vmem:[%s3910_s18 + $0x58] sm:$0xff]  }
 0x416   :  { %1462 = vmatpush1.bf16.msra.mxu0 %v2883_v1  ;;  %v2940_v1 = vld [vmem:[%s3910_s18 + $0x18] sm:$0xff]  }
 0x417   :  { %1463 = vmatprep.subr.bf16.mxu0 %v2888_v11  ;;  %v2941_v11 = vld [vmem:[%s3910_s18 + $0x60] sm:$0xff]  }
 0x41a   :  { %1464 = vmatpush1.bf16.msra.mxu0 %v2886_v13  ;;  %v2942_v13 = vld [vmem:[%s3910_s18 + $0x20] sm:$0xff]  }
 0x41b   :  { %1465 = vmatprep.subr.bf16.mxu0 %v2891_v14  ;;  %v2943_v14 = vld [vmem:[%s3910_s18 + $0x68] sm:$0xff]  }
 0x41e   :  { %1466 = vmatpush1.bf16.msra.mxu0 %v2889_v15  ;;  %v2944_v15 = vld [vmem:[%s3910_s18 + $0x28] sm:$0xff]  }
 0x41f   :  { %1467 = vmatprep.subr.bf16.mxu0 %v2895_v16  ;;  %v2945_v16 = vld [vmem:[%s3910_s18 + $0x70] sm:$0xff]  }
 0x422   :  { %1468 = vmatpush1.bf16.msra.mxu0 %v2893_v17  ;;  %v2946_v17 = vld [vmem:[%s3910_s18 + $0x30] sm:$0xff]  }
 0x423   :  { %1469 = vmatprep.subr.bf16.mxu0 %v2899_v18  ;;  %v2947_v18 = vld [vmem:[%s3910_s18 + $0x78] sm:$0xff]  }
 0x426   :  { %1470 = vmatpush1.bf16.msra.mxu0 %v2897_v19  ;;  %v2948_v19 = vld [vmem:[%s3910_s18 + $0x38] sm:$0xff]  }
 0x427   :  { %1471 = vmatprep.subr.bf16.mxu0 %v2903_v20  ;;  %v2957_v20 = vld [vmem:[%s3911_s19] sm:$0xff]  }
 0x42a   :  { %1472 = vmatpush1.bf16.msra.mxu0 %v2901_v21  ;;  %v2958_v21 = vld [vmem:[%s3911_s19 + $0x8] sm:$0xff]  }
 0x42b   :  { %1473 = vmatprep.subr.bf16.mxu0 %v2907_v22  ;;  %v2959_v22 = vld [vmem:[%s3911_s19 + $0x10] sm:$0xff]  }
 0x42e   :  { %1474 = vmatpush1.bf16.msra.mxu0 %v2905_v23  ;;  %v2960_v23 = vld [vmem:[%s3911_s19 + $0x18] sm:$0xff]  }
 0x42f   :  { %1475 = vmatprep.subr.bf16.mxu0 %v2911_v24  ;;  %v2961_v24 = vld [vmem:[%s3911_s19 + $0x20] sm:$0xff]  }
 0x432   :  { %1476 = vmatpush1.bf16.msra.mxu0 %v2909_v25 }
 0x433   :  { %1477 = vmatprep.subr.bf16.mxu0 %v2915_v26 }
 0x436   :  { %1478 = vmatpush1.bf16.msra.mxu0 %v2913_v27 }
 0x437   :  { %1479 = vmatprep.subr.bf16.mxu0 %v2919_v29  ;;  %v1285_v29 = vld [vmem:[#allocation20] sm:$0x3] }
 0x438   :  { %v1294_v31 = vrot.slane %v1285_v29, %v3736_v56 }
 0x43a   :  { %1480 = vmatpush1.bf16.msra.mxu0 %v2917_v30  ;;  %v1290_v30 = vrot.slane %v1285_v29, %v3734_v54  ;;  %v2950_v54 = vld [vmem:[#allocation23 + $0x8] sm:$0xff]   ;;  %v2973_v29 = vld [vmem:[%s3914_s8] sm:$0xff]  }
 0x43b   :  { %1481 = vmatprep.subr.bf16.mxu0 %v2923_v32 }
 0x43e   :  { %1482 = vmatpush1.bf16.msra.mxu0 %v2921_v33 }
 0x43f   :  { %1483 = vmatprep.subr.bf16.mxu0 %v2926_v35 }
 0x442   :  { %1484 = vmatpush1.bf16.msra.mxu0 %v2924_v34 }
 0x443   :  { %1485 = vmatprep.subr.bf16.mxu0 %v2929_v36 }
 0x446   :  { %1486 = vmatpush1.bf16.msra.mxu0 %v2927_v37 }
 0x447   :  { %1487 = vmatprep.subr.bf16.mxu0 %v2932_v38 }
 0x44a   :  { %1488 = vmatpush1.bf16.msra.mxu0 %v2930_v39 }
 0x44b   :  { %2663 = vmatprep.subr.bf16.mxu0 %v3407_v12 }
 0x4d4   :  { %v1026_v42 = vpop.f32.mrb[8].mxu0 }
 0x4d5   :  { %v1027_v43 = vadd.f32 %v2370_v41, %v1026_v42  ;;  %v2617_v44 = vpop.f32.mrb[9].mxu0 }
 0x4d6   :  { %v1029_v45 = vpop.f32.mrb[10].mxu0 }
 0x4d7   :  { %vm1032_vm9 = vcmp.ge.f32.partialorder %v1027_v43, 0.0  ;;  %v1033_v46 = vmul.f32 0.25, %v1027_v43  ;;  %v2618_v47 = vpop.f32.mrb[11].mxu0  ;;  %v2379_v45 = vld [vmem:[#allocation14] ss:$0 sm:$0xff] }
 0x4d9   :  { %v1034_v49 = vsel %vm1032_vm9, %v1027_v43, %v1033_v46  ;;  %v2949_v43 = vld [vmem:[#allocation23] sm:$0xff]   ;;  %v2951_v46 = vld [vmem:[#allocation23 + $0x10] sm:$0xff]  }
 0x4da   :  { %v1035_v51 = vpack.c.bf16 %v1034_v49, %v1034_v49  ;;  %v2952_v49 = vld [vmem:[#allocation23 + $0x18] sm:$0xff]  }
 0x4dc   :  { %2636 = vmatmul.mubr.bf16.vlgmr.msra.gmra.mrb[8].mxu1 %v1035_v51  ;;  %v2953_v51 = vld [vmem:[#allocation22] sm:$0xff]  }
 0x4dd   :  { %2530 = vmatpush3.bf16.msra.mxu1 %v2934_v50 }
 0x4de   :  { %2531 = vmatprep.subr.bf16.mxu1 %v2935_v53  ;;  %v2350_v53 = vld [vmem:[%s3912_s22] ss:$0 sm:$0xff] }
 0x4e0   :  { %v1238_v60 = vpop.f32.mrb[12].mxu0 }
 0x4e1   :  { %v1239_v61 = vadd.f32 %v1238_v60, %v1163_v55  ;;  %v1240_v62 = vpop.f32.mrb[13].mxu0  ;;  %2532 = vmatpush3.bf16.msra.mxu1 %v2936_v57  ;;  %v2954_v55 = vld [vmem:[#allocation22 + $0x8] sm:$0xff]   ;;  %v848_v57 = vadd.f32 %v3775_v48, %v2350_v53  ;;  %v2956_v60 = vld [vmem:[#allocation22 + $0x18] sm:$0xff]  }
 0x4e2   :  { %v1241_v0 = vadd.f32 %v1240_v62, %v1167_v58  ;;  %v1242_v2 = vpop.f32.mrb[14].mxu0  ;;  %2533 = vmatprep.subr.bf16.mxu1 %v2937_v59  ;;  %v2955_v58 = vld [vmem:[#allocation22 + $0x10] sm:$0xff]   ;;  %v2962_v48 = vld [vmem:[%s3911_s19 + $0x28] sm:$0xff]  }
 0x4e3   :  { %vm1245_vm10 = vcmp.ge.f32.partialorder %v1239_v61, 0.0  ;;  %v1247_v3 = vmul.f32 0.25, %v1239_v61  ;;  %v1243_v4 = vpop.f32.mrb[15].mxu0  ;;  %v854_v59 = vmul.f32 0.25, %v848_v57  ;;  %vm853_vm0 = vcmp.ge.f32.partialorder %v848_v57, 0.0  ;;  %v2965_v2 = vld [vmem:[#allocation25] sm:$0xff]  }
 0x4e4   :  { %vm1246_vm11 = vcmp.ge.f32.partialorder %v1241_v0, 0.0  ;;  %v1248_v5 = vmul.f32 0.25, %v1241_v0  ;;  %v2967_v4 = vld [vmem:[#allocation25 + $0x10] sm:$0xff]  }
 0x4e5   :  { %v1249_v6 = vsel %vm1245_vm10, %v1239_v61, %v1247_v3  ;;  %2534 = vmatpush3.bf16.msra.mxu1 %v2938_v63  ;;  %v855_v61 = vsel %vm853_vm0, %v848_v57, %v854_v59  ;;  %v2963_v63 = vld [vmem:[%s3911_s19 + $0x30] sm:$0xff]  }
 0x4e6   :  { %v1250_v7 = vsel %vm1246_vm11, %v1241_v0, %v1248_v5  ;;  %v1251_v9 = vpack.c.bf16 %v1249_v6, %v1249_v6  ;;  %2535 = vmatprep.subr.bf16.mxu1 %v2939_v10  ;;  %v1684_v62 = vpack.c.bf16 %v855_v61, %v855_v61  ;;  %v2964_v0 = vld [vmem:[%s3911_s19 + $0x38] sm:$0xff]   ;;  %v2966_v3 = vld [vmem:[#allocation25 + $0x8] sm:$0xff]   ;;  %v2969_v6 = vld [vmem:[#allocation25 + $0x20] sm:$0xff]  }
 0x4e7   :  { %v1252_v8 = vpack.c.bf16 %v1250_v7, %v1250_v7  ;;  %v2968_v5 = vld [vmem:[#allocation25 + $0x18] sm:$0xff]   ;;  %v2970_v7 = vld [vmem:[#allocation25 + $0x28] sm:$0xff]  }
 0x4e8   :  { %v2983_v59 = vld [vmem:[%s3562_s25 + $0x10] sm:$0xff]   ;;  %v2472_v61 = vld [vmem:[%s3557_s6] ss:$0 sm:$0xff] }
 0x4e9   :  { %1489 = vmatprep.mubr.bf16.mxu0 %v1252_v8  ;;  %2536 = vmatpush3.bf16.msra.mxu1 %v2940_v1 }
 0x4ea   :  { %1490 = vmatmul.mubr.bf16.vlgmr.msra.gmra.mrb[16].mxu0 %v1251_v9  ;;  %2537 = vmatprep.subr.bf16.mxu1 %v2941_v11  ;;  %v2427_v9 = vld [vmem:[%s3913_s30] ss:$0 sm:$0xff] }
 0x4eb   :  { %2679 = vmatprep.mubr.msk.bf16.mxu0 %vm3408_vm3, %v3407_v12  ;;  %2664 = vmatpush3.bf16.msra.mxu0 %v2957_v20 }
 0x4ec   :  { %2665 = vmatprep.subr.bf16.mxu0 %v3407_v12 }
 0x4ed   :  { %2538 = vmatpush3.bf16.msra.mxu1 %v2942_v13 }
 0x4ee   :  { %2539 = vmatprep.subr.bf16.mxu1 %v2943_v14 }
 0x4ef   :  { %2666 = vmatpush3.bf16.msra.mxu0 %v2958_v21 }
 0x4f0   :  { %2667 = vmatprep.subr.bf16.mxu0 %v3407_v12 }
 0x4f1   :  { %2540 = vmatpush3.bf16.msra.mxu1 %v2944_v15 }
 0x4f2   :  { %2541 = vmatprep.subr.bf16.mxu1 %v2945_v16 }
 0x4f3   :  { %2668 = vmatpush3.bf16.msra.mxu0 %v2959_v22 }
 0x4f4   :  { %2669 = vmatprep.subr.bf16.mxu0 %v3407_v12 }
 0x4f5   :  { %2542 = vmatpush3.bf16.msra.mxu1 %v2946_v17 }
 0x4f6   :  { %2543 = vmatprep.subr.bf16.mxu1 %v2947_v18 }
 0x4f7   :  { %2670 = vmatpush3.bf16.msra.mxu0 %v2960_v23 }
 0x4f8   :  { %2671 = vmatprep.subr.bf16.mxu0 %v3407_v12 }
 0x4f9   :  { %2544 = vmatpush3.bf16.msra.mxu1 %v2948_v19 }
 0x4fa   :  { %2639 = vmatprep.subr.bf16.mxu1 %v3407_v12 }
 0x4fb   :  { %2672 = vmatpush3.bf16.msra.mxu0 %v2961_v24 }
 0x4fc   :  { %2673 = vmatprep.subr.bf16.mxu0 %v3407_v12 }
 0x4ff   :  { %2674 = vmatpush3.bf16.msra.mxu0 %v2962_v48 }
 0x500   :  { %2675 = vmatprep.subr.bf16.mxu0 %v3407_v12 }
 0x503   :  { %2676 = vmatpush3.bf16.msra.mxu0 %v2963_v63 }
 0x504   :  { %2677 = vmatprep.subr.bf16.mxu0 %v3407_v12 }
 0x507   :  { %2678 = vmatpush3.bf16.msra.mxu0 %v2964_v0 }
 0x508   :  { %2703 = vmatprep.subr.bf16.mxu0 %v3407_v12 }
 0x5af   :  { %v1141_v25 = vpop.f32.mrb[8].mxu1 }
 0x5b0   :  { %v2637_v26 = vpop.f32.mrb[9].mxu1  ;;  %v1142_v56 = vadd.f32 %v2379_v45, %v1141_v25  ;;  %v2979_v45 = vld [vmem:[%s3914_s8 + $0x30] sm:$0xff]  }
 0x5b1   :  { %v1144_v27 = vpop.f32.mrb[10].mxu1 }
 0x5b2   :  { %v2638_v28 = vpop.f32.mrb[11].mxu1  ;;  %v1148_v47 = vmul.f32 0.25, %v1142_v56  ;;  %vm1147_vm14 = vcmp.ge.f32.partialorder %v1142_v56, 0.0  ;;  %v2971_v27 = vld [vmem:[#allocation25 + $0x30] sm:$0xff]  }
 0x5b3   :  { %v2972_v28 = vld [vmem:[#allocation25 + $0x38] sm:$0xff]  }
 0x5b4   :  { %v1149_v50 = vsel %vm1147_vm14, %v1142_v56, %v1148_v47  ;;  %v2981_v56 = vld [vmem:[%s3562_s25] sm:$0xff]  }
 0x5b5   :  { %v1693_v52 = vpack.c.bf16 %v1149_v50, %v1149_v50  ;;  %v2463_v47 = vld [vmem:[#allocation26] ss:$0 sm:$0xff] }
 0x5bd   :  { %v1491_v32 = vpop.f32.mrb[16].mxu0 }
 0x5be   :  { %v1492_v33 = vadd.f32 %v1491_v32, %v1290_v30  ;;  %v1493_v34 = vpop.f32.mrb[17].mxu0  ;;  %v2974_v30 = vld [vmem:[%s3914_s8 + $0x8] sm:$0xff]   ;;  %v2976_v32 = vld [vmem:[%s3914_s8 + $0x18] sm:$0xff]  }
 0x5bf   :  { %v1494_v35 = vadd.f32 %v1493_v34, %v1294_v31  ;;  %v1495_v36 = vpop.f32.mrb[18].mxu0  ;;  %v2975_v31 = vld [vmem:[%s3914_s8 + $0x10] sm:$0xff]   ;;  %v2978_v34 = vld [vmem:[%s3914_s8 + $0x28] sm:$0xff]  }
 0x5c0   :  { %vm1498_vm12 = vcmp.ge.f32.partialorder %v1492_v33, 0.0  ;;  %v1500_v37 = vmul.f32 0.25, %v1492_v33  ;;  %v1496_v38 = vpop.f32.mrb[19].mxu0  ;;  %v2462_v36 = vld [vmem:[%s3915_s14] ss:$0 sm:$0xff] }
 0x5c1   :  { %vm1499_vm13 = vcmp.ge.f32.partialorder %v1494_v35, 0.0  ;;  %v1501_v39 = vmul.f32 0.25, %v1494_v35 }
 0x5c2   :  { %v1502_v40 = vsel %vm1498_vm12, %v1492_v33, %v1500_v37  ;;  %v2977_v33 = vld [vmem:[%s3914_s8 + $0x20] sm:$0xff]  }
 0x5c3   :  { %v1503_v41 = vsel %vm1499_vm13, %v1494_v35, %v1501_v39  ;;  %v1504_v44 = vpack.c.bf16 %v1502_v40, %v1502_v40 }
 0x5c4   :  { %v1505_v42 = vpack.c.bf16 %v1503_v41, %v1503_v41 }
 0x5c6   :  { %1673 = vmatprep.mubr.bf16.mxu1 %v1505_v42 }
 0x5c7   :  { %1674 = vmatmul.mubr.bf16.vlgmr.msra.gmra.mrb[12].mxu1 %v1504_v44 }
 0x5c8   :  { %2640 = vmatpush3.bf16.msra.mxu1 %v2949_v43  ;;  %2647 = vmatprep.mubr.msk.bf16.mxu1 %vm3408_vm3, %v3407_v12 }
 0x5c9   :  { %2641 = vmatprep.subr.bf16.mxu1 %v3407_v12 }
 0x5cc   :  { %2642 = vmatpush3.bf16.msra.mxu1 %v2950_v54  ;;  %v2980_v54 = vld [vmem:[%s3914_s8 + $0x38] sm:$0xff]  }
 0x5cd   :  { %2643 = vmatprep.subr.bf16.mxu1 %v3407_v12 }
 0x5d0   :  { %2644 = vmatpush3.bf16.msra.mxu1 %v2951_v46  ;;  %v2982_v46 = vld [vmem:[%s3562_s25 + $0x8] sm:$0xff]  }
 0x5d1   :  { %2645 = vmatprep.subr.bf16.mxu1 %v3407_v12 }
 0x5d4   :  { %2646 = vmatpush3.bf16.msra.mxu1 %v2952_v49 }
 0x5d5   :  { %2651 = vmatprep.subr.bf16.mxu1 %v3407_v12 }
 0x5d7   :  { %2648 = vmatmul.mubr.msk.bf16.vlgmr.msra.gmra.mrb[16].mxu1 %vm1726_vm15, %v1693_v52 }
 0x5d8   :  { %2652 = vmatpush3.bf16.msra.mxu1 %v2953_v51  ;;  %2659 = vmatprep.mubr.msk.bf16.mxu1 %vm3408_vm3, %v3407_v12 }
 0x5d9   :  { %2653 = vmatprep.subr.bf16.mxu1 %v3407_v12 }
 0x5dc   :  { %2654 = vmatpush3.bf16.msra.mxu1 %v2954_v55 }
 0x5dd   :  { %2655 = vmatprep.subr.bf16.mxu1 %v3407_v12 }
 0x5e0   :  { %2656 = vmatpush3.bf16.msra.mxu1 %v2955_v58 }
 0x5e1   :  { %2657 = vmatprep.subr.bf16.mxu1 %v3407_v12 }
 0x5e4   :  { %2658 = vmatpush3.bf16.msra.mxu1 %v2956_v60  ;;  %v2984_v60 = vld [vmem:[%s3562_s25 + $0x18] sm:$0xff]  }
 0x5e5   :  { %2683 = vmatprep.subr.bf16.mxu1 %v3407_v12 }
 0x5e7   :  { %2660 = vmatmul.mubr.msk.bf16.vlgmr.msra.gmra.mrb[20].mxu1 %vm1726_vm15, %v1684_v62 }
 0x5e8   :  { %2699 = vmatprep.mubr.msk.bf16.mxu1 %vm3408_vm3, %v3407_v12  ;;  %2684 = vmatpush3.bf16.msra.mxu1 %v2965_v2 }
 0x5e9   :  { %2685 = vmatprep.subr.bf16.mxu1 %v3407_v12 }
 0x5ec   :  { %2686 = vmatpush3.bf16.msra.mxu1 %v2966_v3 }
 0x5ed   :  { %2687 = vmatprep.subr.bf16.mxu1 %v3407_v12 }
 0x5f0   :  { %2688 = vmatpush3.bf16.msra.mxu1 %v2967_v4 }
 0x5f1   :  { %2689 = vmatprep.subr.bf16.mxu1 %v3407_v12 }
 0x5f4   :  { %2690 = vmatpush3.bf16.msra.mxu1 %v2968_v5 }
 0x5f5   :  { %2691 = vmatprep.subr.bf16.mxu1 %v3407_v12 }
 0x5f8   :  { %2692 = vmatpush3.bf16.msra.mxu1 %v2969_v6  ;;  %v2481_v6 = vld [vmem:[#allocation2] ss:$0 sm:$0xff] }
 0x5f9   :  { %2693 = vmatprep.subr.bf16.mxu1 %v3407_v12 }
 0x5fc   :  { %2694 = vmatpush3.bf16.msra.mxu1 %v2970_v7 }
 0x5fd   :  { %2695 = vmatprep.subr.bf16.mxu1 %v3407_v12 }
 0x600   :  { %2696 = vmatpush3.bf16.msra.mxu1 %v2971_v27 }
 0x601   :  { %2697 = vmatprep.subr.bf16.mxu1 %v3407_v12 }
 0x604   :  { %2698 = vmatpush3.bf16.msra.mxu1 %v2972_v28 }
 0x605   :  { %2723 = vmatprep.subr.bf16.mxu1 %v3407_v12 }
 0x69a   :  { %v2545_v8 = vpop.f32.mrb[12].mxu1 }
 0x69b   :  { %v2546_v10 = vpop.f32.mrb[13].mxu1 }
 0x69c   :  { %v2547_v1 = vadd.f32 %v2546_v10, %v2545_v8  ;;  %v2548_v11 = vpop.f32.mrb[14].mxu1 }
 0x69d   :  { %v2549_v13 = vpop.f32.mrb[15].mxu1 }
 0x69e   :  { %v1676_v14 = vadd.f32 %v2547_v1, %v2427_v9 }
 0x6a0   :  { %vm1681_vm1 = vcmp.ge.f32.partialorder %v1676_v14, 0.0  ;;  %v1682_v15 = vmul.f32 0.25, %v1676_v14 }
 0x6a2   :  { %v1683_v16 = vsel %vm1681_vm1, %v1676_v14, %v1682_v15 }
 0x6a3   :  { %v1837_v17 = vpack.c.bf16 %v1683_v16, %v1683_v16 }
 0x6a5   :  { %2680 = vmatmul.mubr.bf16.vlgmr.msra.gmra.mrb[20].mxu0 %v1837_v17 }
 0x6a6   :  { %2719 = vmatprep.mubr.msk.bf16.mxu0 %vm3408_vm3, %v3407_v12  ;;  %2704 = vmatpush3.bf16.msra.mxu0 %v2973_v29 }
 0x6a7   :  { %2705 = vmatprep.subr.bf16.mxu0 %v3407_v12 }
 0x6aa   :  { %v1764_v18 = vpop.f32.mrb[16].mxu1  ;;  %2706 = vmatpush3.bf16.msra.mxu0 %v2974_v30 }
 0x6ab   :  { %v2649_v19 = vpop.f32.mrb[17].mxu1  ;;  %2707 = vmatprep.subr.bf16.mxu0 %v3407_v12 }
 0x6ac   :  { %v1767_v20 = vpop.f32.mrb[18].mxu1 }
 0x6ad   :  { %v2650_v21 = vpop.f32.mrb[19].mxu1 }
 0x6ae   :  { %2708 = vmatpush3.bf16.msra.mxu0 %v2975_v31 }
 0x6af   :  { %2709 = vmatprep.subr.bf16.mxu0 %v3407_v12 }
 0x6b2   :  { %2710 = vmatpush3.bf16.msra.mxu0 %v2976_v32 }
 0x6b3   :  { %2711 = vmatprep.subr.bf16.mxu0 %v3407_v12 }
 0x6b6   :  { %2712 = vmatpush3.bf16.msra.mxu0 %v2977_v33 }
 0x6b7   :  { %2713 = vmatprep.subr.bf16.mxu0 %v3407_v12 }
 0x6ba   :  { %v1831_v22 = vpop.f32.mrb[20].mxu1  ;;  %2714 = vmatpush3.bf16.msra.mxu0 %v2978_v34 }
 0x6bb   :  { %v1832_v23 = vadd.f32 %v1831_v22, %v1764_v18  ;;  %v2661_v24 = vpop.f32.mrb[21].mxu1  ;;  %2715 = vmatprep.subr.bf16.mxu0 %v3407_v12 }
 0x6bc   :  { %v1834_v25 = vpop.f32.mrb[22].mxu1 }
 0x6bd   :  { %v2662_v26 = vpop.f32.mrb[23].mxu1 }
 0x6be   :  { %2716 = vmatpush3.bf16.msra.mxu0 %v2979_v45 }
 0x6bf   :  { %2717 = vmatprep.subr.bf16.mxu0 %v3407_v12 }
 0x6c2   :  { %2718 = vmatpush3.bf16.msra.mxu0 %v2980_v54 }
 0x778   :  { %v1936_v35 = vpop.f32.mrb[20].mxu0 }
 0x779   :  { %v1942_v37 = vadd.f32 %v1936_v35, %v1832_v23  ;;  %v2681_v38 = vpop.f32.mrb[21].mxu0 }
 0x77a   :  { %v1939_v39 = vpop.f32.mrb[22].mxu0 }
 0x77b   :  { %v1950_v40 = vadd.f32 %v2462_v36, %v1942_v37  ;;  %v2682_v41 = vpop.f32.mrb[23].mxu0 }
 0x77d   :  { %vm1951_vm2 = vcmp.ge.f32.partialorder %v1950_v40, 0.0  ;;  %v1952_v42 = vmul.f32 0.25, %v1950_v40 }
 0x77f   :  { %v1953_v43 = vsel %vm1951_vm2, %v1950_v40, %v1952_v42 }
 0x780   :  { %v1954_v44 = vpack.c.bf16 %v1953_v43, %v1953_v43 }
 0x782   :  { %2700 = vmatmul.mubr.bf16.vlgmr.msra.gmra.mrb[24].mxu1 %v1954_v44 }
 0x783   :  { %2731 = vmatprep.mubr.msk.bf16.mxu1 %vm3408_vm3, %v3407_v12  ;;  %2724 = vmatpush3.bf16.msra.mxu1 %v2981_v56 }
 0x784   :  { %2725 = vmatprep.subr.bf16.mxu1 %v3407_v12 }
 0x787   :  { %2726 = vmatpush3.bf16.msra.mxu1 %v2982_v46 }
 0x788   :  { %2727 = vmatprep.subr.bf16.mxu1 %v3407_v12 }
 0x78b   :  { %2728 = vmatpush3.bf16.msra.mxu1 %v2983_v59 }
 0x78c   :  { %2729 = vmatprep.subr.bf16.mxu1 %v3407_v12 }
 0x78f   :  { %2730 = vmatpush3.bf16.msra.mxu1 %v2984_v60 }
 0x855   :  { %v2060_v49 = vpop.f32.mrb[24].mxu1 }
 0x856   :  { %v2061_v50 = vadd.f32 %v2463_v47, %v2060_v49  ;;  %v2701_v51 = vpop.f32.mrb[25].mxu1 }
 0x857   :  { %v2063_v52 = vpop.f32.mrb[26].mxu1 }
 0x858   :  { %vm2066_vm3 = vcmp.ge.f32.partialorder %v2061_v50, 0.0  ;;  %v2067_v53 = vmul.f32 0.25, %v2061_v50  ;;  %v2702_v55 = vpop.f32.mrb[27].mxu1 }
 0x85a   :  { %v2068_v57 = vsel %vm2066_vm3, %v2061_v50, %v2067_v53 }
 0x85b   :  { %v2069_v58 = vpack.c.bf16 %v2068_v57, %v2068_v57 }
 0x85d   :  { %2720 = vmatmul.mubr.bf16.vlgmr.msra.gmra.mrb[24].mxu0 %v2069_v58 }
 0x930   :  { %v2175_v62 = vpop.f32.mrb[24].mxu0 }
 0x931   :  { %v2176_v48 = vadd.f32 %v2472_v61, %v2175_v62  ;;  %v2721_v63 = vpop.f32.mrb[25].mxu0 }
 0x932   :  { %v2178_v0 = vpop.f32.mrb[26].mxu0 }
 0x933   :  { %vm2181_vm4 = vcmp.ge.f32.partialorder %v2176_v48, 0.0  ;;  %v2182_v2 = vmul.f32 0.25, %v2176_v48  ;;  %v2722_v3 = vpop.f32.mrb[27].mxu0 }
 0x935   :  { %v2183_v4 = vsel %vm2181_vm4, %v2176_v48, %v2182_v2 }
 0x936   :  { %v2184_v5 = vpack.c.bf16 %v2183_v4, %v2183_v4 }
 0x938   :  { %2732 = vmatmul.mubr.msk.bf16.vlgmr.msra.gmra.mrb[28].mxu1 %vm1726_vm15, %v2184_v5 }
 0xa0b   :  { %v2261_v7 = vpop.f32.mrb[28].mxu1 }
 0xa0c   :  { %v2262_v8 = vadd.f32 %v2481_v6, %v2261_v7  ;;  %v2733_v12 = vpop.f32.mrb[29].mxu1 }
 0xa0d   :  { %v2264_v9 = vpop.f32.mrb[30].mxu1 }
 0xa0e   :  { %2268 = vst.msk [vmem:[%s3570_s13] sm:$0xff] %vm2267_vm5, %v2262_v8  ;;  %v2734_v10 = vpop.f32.mrb[31].mxu1 }
 0xa0f   :  { %2273 = vsyncpa [#allocation4], 1 }
 0xa10   :  { %2274 = vsyncpa [#allocation6], 1 }
 0xa11   :  { %2275 = vsyncpa [#allocation9], 1 }
 0xa12   :  { %2276 = vsyncpa [#allocation12], 1 }
 0xa13   :  { %2277 = vsyncpa [#allocation15], 1 }
 0xa14   :  { %2278 = vsyncpa [#allocation18], 1 }
 0xa15   :  { %2279 = vsyncpa [#allocation21], 1 }
 0xa16   :  { %2280 = vsyncpa [#allocation24], 1 }
 0xa17   :  { %2281 = vsyncpa [#allocation27], 1 }

</bundles_post_ra>
